<compile_context>
chip_gen: v6e
topology: v6e:2x2x1
jax: 0.10.0
libtpu: 0.0.40
codegen_flags: <defaults>
</compile_context>

<pallas_src>
import jax
import jax.numpy as jnp
from jax.experimental import pallas as pl
from jax.experimental.pallas import tpu as pltpu


def _round_up_lanes(n):
    return ((n + 127) // 128) * 128


# ----------------------------------------------------------------------------
# Fused matmul + bias kernel:  out = x @ w + b   (bf16 operands, f32 accumulate)
# Used for (a) the hoisted input-gate projection and (b) the final FC layer.
# ----------------------------------------------------------------------------
def _matmul_bias_kernel(x_ref, w_ref, b_ref, o_ref):
    acc = jnp.dot(x_ref[...], w_ref[...], preferred_element_type=jnp.float32)
    o_ref[...] = (acc + b_ref[...]).astype(o_ref.dtype)


def _pick_tile_m(M, K, N, x_bytes, w_bytes, o_bytes, budget=6 * 1024 * 1024):
    w_cost = 2 * (K * N * w_bytes + N * 4)            # weight + bias (double-buffered)
    for t in (512, 256, 128, 64, 32, 16, 8):
        if M % t == 0 and w_cost + 2 * t * (K * x_bytes + N * o_bytes) <= budget:
            return t
    return M                                           # tiny / odd M: one full block


def matmul_bias(x, w, b, out_dtype=jnp.float32):
    """x: (M, K), w: (K, N), b: (1, N) f32  ->  (M, N) out_dtype."""
    M, K = x.shape
    N = w.shape[1]
    tm = _pick_tile_m(M, K, N, x.dtype.itemsize, w.dtype.itemsize,
                      jnp.dtype(out_dtype).itemsize)
    return pl.pallas_call(
        _matmul_bias_kernel,
        grid=(pl.cdiv(M, tm),),
        in_specs=[pl.BlockSpec((tm, K), lambda i: (i, 0)),
                  pl.BlockSpec((K, N), lambda i: (0, 0)),
                  pl.BlockSpec((1, N), lambda i: (0, 0))],
        out_specs=pl.BlockSpec((tm, N), lambda i: (i, 0)),
        out_shape=jax.ShapeDtypeStruct((M, N), out_dtype),
        compiler_params=pltpu.CompilerParams(dimension_semantics=("parallel",)),
    )(x, w, b)


# ----------------------------------------------------------------------------
# Bidirectional LSTM recurrence kernel (PyTorch nn.LSTM cell semantics).
# Both directions fused via block-diagonal W_hh; input gates pre-projected.
# Grid = (batch tiles, time chunks); carries persist in VMEM scratch.
# ----------------------------------------------------------------------------
def make_bilstm_kernel(Tc, H, Bt, out_width):
    H2, H4, H6 = 2 * H, 4 * H, 6 * H
    pad_lanes = out_width - H2
    unroll = min(8, Tc)

    def kernel(gi_ref, whh_ref, out_ref, h_scr, c_scr):
        # gi_ref : (Tc, Bt, 8H) bf16 pre-projected gates, columns
        #          [i_f,i_b, f_f,f_b, o_f,o_b, g_f,g_b]; backward cols pre-time-reversed.
        # whh_ref: (2H, 8H) bf16 block-diagonal fused recurrent weight.
        # out_ref: (Tc, Bt, out_width) bf16 lane-dense rows [h_f(t) | h_b(T-1-t) | 0].
        # h_scr/c_scr: (Bt, 2H) f32 carries, persist across time-chunk grid steps.
        @pl.when(pl.program_id(1) == 0)
        def _():
            h_scr[...] = jnp.zeros_like(h_scr)
            c_scr[...] = jnp.zeros_like(c_scr)

        w = whh_ref[...]                                        # loaded once per chunk
        pad = jnp.zeros((Bt, pad_lanes), jnp.bfloat16) if pad_lanes else None

        def step(t, carry):
            h, c = carry                                        # (Bt, 2H) f32
            g_all = gi_ref[t].astype(jnp.float32) + jnp.dot(
                h.astype(jnp.bfloat16), w, preferred_element_type=jnp.float32)
            s = jax.nn.sigmoid(g_all[:, :H6])                   # one wide slab: i, f, o
            g = jnp.tanh(g_all[:, H6:])                         # one wide slab: g
            c = s[:, H2:H4] * c + s[:, :H2] * g                 # f*c + i*g (both dirs)
            h = s[:, H4:H6] * jnp.tanh(c)                       # o * tanh(c)
            h_out = h.astype(jnp.bfloat16)
            if pad_lanes:
                h_out = jnp.concatenate([h_out, pad], axis=-1)  # 128-lane-dense store
            out_ref[t] = h_out
            return h, c

        h, c = jax.lax.fori_loop(0, Tc, step, (h_scr[...], c_scr[...]), unroll=unroll)
        h_scr[...] = h
        c_scr[...] = c

    return kernel


def _pick_time_chunk(T):
    for tc in (64, 32, 16, 8, 4, 2):
        if T % tc == 0:
            return tc
    return T


def _pick_batch_tile(B, Tc, H, out_width, budget=8 * 1024 * 1024):
    if B % 8 != 0:
        return B
    whh_cost = 2 * (2 * H) * (8 * H) * 2
    for bt in (256, 128, 64, 32, 16, 8):
        if B % bt != 0:
            continue
        if B >= 16 and bt > B // 2:        # keep >=2 batch tiles so a 2nd TC has work
            continue
        cost = (whh_cost
                + 2 * Tc * bt * (8 * H + out_width) * 2   # double-buffered gi+out (bf16)
                + 2 * bt * 2 * H * 4)                     # carry scratch (f32)
        if cost <= budget:
            return bt
    return 8


def bilstm(gi_tbg, whh_blk, H, out_width):
    """gi_tbg: (T, B, 8H) bf16 (backward-gate cols time-reversed)
       -> (T, B, out_width) bf16 rows = [h_f(t) | h_b(T-1-t) | 0]."""
    T, B, G8 = gi_tbg.shape
    Tc = _pick_time_chunk(T)
    Bt = _pick_batch_tile(B, Tc, H, out_width)
    return pl.pallas_call(
        make_bilstm_kernel(Tc, H, Bt, out_width),
        grid=(B // Bt, T // Tc),
        in_specs=[pl.BlockSpec((Tc, Bt, G8), lambda b, t: (t, b, 0)),
                  pl.BlockSpec((2 * H, G8), lambda b, t: (0, 0))],
        out_specs=pl.BlockSpec((Tc, Bt, out_width), lambda b, t: (t, b, 0)),
        out_shape=jax.ShapeDtypeStruct((T, B, out_width), jnp.bfloat16),
        scratch_shapes=[pltpu.VMEM((Bt, 2 * H), jnp.float32),
                        pltpu.VMEM((Bt, 2 * H), jnp.float32)],
        compiler_params=pltpu.CompilerParams(
            dimension_semantics=("parallel", "arbitrary")),
    )(gi_tbg, whh_blk)


# ----------------------------------------------------------------------------
# Weight packing (mirrors nn.Embedding / nn.LSTM / nn.Linear, stored directly in
# the fused / reordered / padded kernel layout).
# ----------------------------------------------------------------------------
def _split_ifgo(m, H):
    return m[..., 0:H], m[..., H:2 * H], m[..., 2 * H:3 * H], m[..., 3 * H:4 * H]


def _pack_gate_cols(mat_f, mat_b, H):
    """Fused column layout [i_f,i_b, f_f,f_b, o_f,o_b, g_f,g_b]: sigmoid gates in one
    contiguous 6H slab, tanh gates in one 2H slab, directions interleaved so cell
    updates act on [fwd|bwd]-packed 2H slabs with no lane shuffles."""
    i_f, f_f, g_f, o_f = _split_ifgo(mat_f, H)
    i_b, f_b, g_b, o_b = _split_ifgo(mat_b, H)
    return jnp.concatenate([i_f, i_b, f_f, f_b, o_f, o_b, g_f, g_b], axis=-1)


def init_params(key, cfg):
    # TODO(synk): bidirectional=False (unidirectional LSTM) path is not implemented;
    # the chosen config uses bidirectional=True.
    assert cfg['bidirectional'], "only bidirectional=True implemented"
    V, E, H = cfg['vocab_size'], cfg['embed_size'], cfg['hidden_size']
    L, C = cfg['num_layers'], cfg['class_num']
    H2 = 2 * H
    in_pad = _round_up_lanes(H2)
    k_embed, k_lstm, k_fc = jax.random.split(key, 3)
    bound = 1.0 / (H ** 0.5)

    def uni(k, shape, b):
        return jax.random.uniform(k, shape, jnp.float32, -b, b)

    layers = []
    for l, kl in enumerate(jax.random.split(k_lstm, L)):
        in_size = E if l == 0 else H2
        ks = jax.random.split(kl, 8)
        wih_f = uni(ks[0], (in_size, 4 * H), bound)   # W_ih^T, gate cols (i,f,g,o)
        wih_b = uni(ks[1], (in_size, 4 * H), bound)
        whh_f = uni(ks[2], (H, 4 * H), bound)         # W_hh^T
        whh_b = uni(ks[3], (H, 4 * H), bound)
        b_f = uni(ks[4], (1, 4 * H), bound) + uni(ks[5], (1, 4 * H), bound)  # b_ih+b_hh
        b_b = uni(ks[6], (1, 4 * H), bound) + uni(ks[7], (1, 4 * H), bound)

        wih = _pack_gate_cols(wih_f, wih_b, H)                      # (in_size, 8H)
        if l > 0:
            # previous layer emits a lane-padded [h_f | h_b | 0] slab; zero rows let the
            # padded input multiply straight through without an external slice.
            wih = jnp.concatenate(
                [wih, jnp.zeros((in_pad - in_size, 8 * H), jnp.float32)], axis=0)
        # block-diagonal fusion: rows 0:H act on h_f, rows H:2H on h_b -> one
        # (Bt, 2H) @ (2H, 8H) MXU push per timestep for both directions.
        zH = jnp.zeros((H, 4 * H), jnp.float32)
        whh = _pack_gate_cols(jnp.concatenate([whh_f, zH], axis=0),
                              jnp.concatenate([zH, whh_b], axis=0), H)   # (2H, 8H)
        layers.append(dict(wih=wih.astype(jnp.bfloat16),
                           whh=whh.astype(jnp.bfloat16),
                           b=_pack_gate_cols(b_f, b_b, H)))              # bias kept f32

    fc_bound = 1.0 / (H2 ** 0.5)
    kf1, kf2 = jax.random.split(k_fc)
    fc_w = uni(kf1, (H2, C), fc_bound)
    fc_w = jnp.concatenate([fc_w, jnp.zeros((in_pad - H2, C), jnp.float32)], axis=0)
    return dict(
        embed=jax.random.normal(k_embed, (V, E), jnp.float32),
        lstm=layers,
        fc_wT=fc_w.astype(jnp.bfloat16),
        fc_b=uni(kf2, (1, C), fc_bound))


# ----------------------------------------------------------------------------
# Wrapper-side layout glue (plain XLA) + forward pass
# ----------------------------------------------------------------------------
def _reverse_bwd_gate_time(gi, H):
    """Time-reverse the backward-direction gate columns so the kernel's single
    forward-running loop computes both directions (fwd reads t, bwd reads T-1-t)."""
    T, B, _ = gi.shape
    g5 = gi.reshape(T, B, 4, 2, H)                     # (gate, direction, H)
    g5 = jnp.concatenate([g5[:, :, :, 0:1, :], g5[::-1, :, :, 1:2, :]], axis=3)
    return g5.reshape(T, B, 8 * H)


def _unreverse_bwd_lanes(out, H):
    """Kernel emits [h_f(t) | h_b(T-1-t) | pad]; restore time order of the bwd lanes."""
    return jnp.concatenate(
        [out[:, :, :H], out[::-1, :, H:2 * H], out[:, :, 2 * H:]], axis=-1)


def rnn_forward(tokens, params, cfg):
    """tokens: (B, T) int32 -> logits (B, class_num) f32."""
    B, T = tokens.shape
    H = cfg['hidden_size']
    out_width = _round_up_lanes(2 * H)

    # Embedding gather (XLA glue), time-major; bf16 MXU operands downstream.
    x = jnp.take(params['embed'], tokens.T, axis=0, mode='clip')    # (T, B, E)
    x = x.astype(jnp.bfloat16)

    for layer in params['lstm']:
        K = x.shape[-1]
        # Hoisted, fused input projection for ALL timesteps & both directions.
        gi = matmul_bias(x.reshape(T * B, K), layer['wih'], layer['b'],
                         out_dtype=jnp.bfloat16)                    # (T*B, 8H)
        gi = _reverse_bwd_gate_time(gi.reshape(T, B, 8 * H), H)
        # Serial bidirectional recurrence (only h @ W_hh_blockdiag inside).
        out = bilstm(gi, layer['whh'], H, out_width)                # (T, B, out_width)
        x = _unreverse_bwd_lanes(out, H)

    # out[:, -1, :] in batch_first layout == last time step of the time-major output
    # (pad lanes are multiplied by zero rows of the padded FC weight).
    last = x[T - 1]                                                 # (B, out_width)
    return matmul_bias(last, params['fc_wT'], params['fc_b'],
                       out_dtype=jnp.float32)                       # (B, class_num)


if __name__ == "__main__":
    cfg = dict(vocab_size=50, embed_size=32, hidden_size=32, num_layers=2,
               bidirectional=True, dropout=0.1,   # nn.Dropout never applied in forward()
               class_num=4)

    root = jax.random.PRNGKey(0)
    k_params, k_tokens = jax.random.split(root)
    params = init_params(k_params, cfg)

    B, T = 2, 8
    tokens = jax.random.randint(k_tokens, (B, T), 0, cfg['vocab_size'],
                                dtype=jnp.int32)

    fwd = jax.jit(lambda tok, p: rnn_forward(tok, p, cfg))
    logits = jax.block_until_ready(fwd(tokens, params))

    assert logits.shape == (B, cfg['class_num'])
    assert bool(jnp.all(jnp.isfinite(logits)))
    print("KERNEL_OK")
</pallas_src>

<mosaic_0001>
module attributes {stable_mosaic.version = 11 : i64} {
  func.func @_matmul_bias_kernel(%arg0: i32, %arg1: memref<16x32xbf16, #tpu.memory_space<vmem>>, %arg2: memref<32x256xbf16, #tpu.memory_space<vmem>>, %arg3: memref<1x256xf32, #tpu.memory_space<vmem>>, %arg4: memref<16x256xbf16, #tpu.memory_space<vmem>>) attributes {dimension_semantics = [#tpu.dimension_semantics<parallel>], iteration_bounds = array<i64: 1>, scalar_prefetch = 0 : i64, scratch_operands = 0 : i64, tpu.core_type = #tpu.core_type<tc>, window_params = [{transform_indices = @transform_0, window_bounds = array<i64: 16, 32>}, {pipeline_mode = #tpu.pipeline_mode<synchronous>, transform_indices = @transform_1, window_bounds = array<i64: 32, 256>}, {pipeline_mode = #tpu.pipeline_mode<synchronous>, transform_indices = @transform_2, window_bounds = array<i64: 1, 256>}, {transform_indices = @transform_3, window_bounds = array<i64: 16, 256>}]} {
    %c0 = arith.constant 0 : index
    %c0_0 = arith.constant 0 : index
    %0 = vector.load %arg1[%c0, %c0_0] : memref<16x32xbf16, #tpu.memory_space<vmem>>, vector<16x32xbf16>
    %c0_1 = arith.constant 0 : index
    %c0_2 = arith.constant 0 : index
    %1 = vector.load %arg2[%c0_1, %c0_2] : memref<32x256xbf16, #tpu.memory_space<vmem>>, vector<32x256xbf16>
    %cst = arith.constant dense<0.000000e+00> : vector<16x256xf32>
    %2 = tpu.matmul %0, %1, %cst {dimension_numbers = #tpu.dot_dimension_numbers<[1], [0], [0], [1], [0, 0, 1, 1], [], []>} : vector<16x32xbf16>, vector<32x256xbf16>, vector<16x256xf32> -> vector<16x256xf32>
    %c0_3 = arith.constant 0 : index
    %c0_4 = arith.constant 0 : index
    %3 = vector.load %arg3[%c0_3, %c0_4] : memref<1x256xf32, #tpu.memory_space<vmem>>, vector<1x256xf32>
    %4 = vector.broadcast %3 : vector<1x256xf32> to vector<16x256xf32>
    %5 = arith.addf %2, %4 : vector<16x256xf32>
    %6 = arith.truncf %5 : vector<16x256xf32> to vector<16x256xbf16>
    %c0_5 = arith.constant 0 : index
    %c0_6 = arith.constant 0 : index
    %7 = vector.load %arg4[%c0_5, %c0_6] : memref<16x256xbf16, #tpu.memory_space<vmem>>, vector<16x256xbf16>
    tpu.vector_store %arg4[%c0_5, %c0_6], %6 {strides = array<i32>} : memref<16x256xbf16, #tpu.memory_space<vmem>>, vector<16x256xbf16>,
    return
  }
  func.func @transform_0(%arg0: i32) -> (i32, i32) {
    %c0_i32 = arith.constant 0 : i32
    %c0_i32_0 = arith.constant 0 : i32
    return %arg0, %c0_i32 : i32, i32
  }
  func.func @transform_1(%arg0: i32) -> (i32, i32) {
    %c0_i32 = arith.constant 0 : i32
    %c0_i32_0 = arith.constant 0 : i32
    %c0_i32_1 = arith.constant 0 : i32
    return %c0_i32, %c0_i32_0 : i32, i32
  }
  func.func @transform_2(%arg0: i32) -> (i32, i32) {
    %c0_i32 = arith.constant 0 : i32
    %c0_i32_0 = arith.constant 0 : i32
    %c0_i32_1 = arith.constant 0 : i32
    return %c0_i32, %c0_i32_0 : i32, i32
  }
  func.func @transform_3(%arg0: i32) -> (i32, i32) {
    %c0_i32 = arith.constant 0 : i32
    %c0_i32_0 = arith.constant 0 : i32
    return %arg0, %c0_i32 : i32, i32
  }
}

module attributes {stable_mosaic.version = 11 : i64} {
  func.func @kernel(%arg0: i32, %arg1: i32, %arg2: memref<8x2x256xbf16, #tpu.memory_space<vmem>>, %arg3: memref<64x256xbf16, #tpu.memory_space<vmem>>, %arg4: memref<8x2x128xbf16, #tpu.memory_space<vmem>>, %arg5: memref<2x64xf32, #tpu.memory_space<vmem>>, %arg6: memref<2x64xf32, #tpu.memory_space<vmem>>) attributes {dimension_semantics = [#tpu.dimension_semantics<parallel>, #tpu.dimension_semantics<arbitrary>], iteration_bounds = array<i64: 1, 1>, scalar_prefetch = 0 : i64, scratch_operands = 2 : i64, tpu.core_type = #tpu.core_type<tc>, window_params = [{transform_indices = @transform_0, window_bounds = array<i64: 8, 2, 256>}, {pipeline_mode = #tpu.pipeline_mode<synchronous>, transform_indices = @transform_1, window_bounds = array<i64: 64, 256>}, {transform_indices = @transform_2, window_bounds = array<i64: 8, 2, 128>}]} {
    %c0_i32 = arith.constant 0 : i32
    %0 = arith.cmpi eq, %arg1, %c0_i32 : i32
    %1 = arith.extui %0 : i1 to i32
    %c0_i32_0 = arith.constant 0 : i32
    %2 = arith.cmpi ne, %1, %c0_i32_0 : i32
    scf.if %2 {
      %cst_59 = arith.constant 0.000000e+00 : f32
      %241 = vector.broadcast %cst_59 : f32 to vector<2x64xf32>
      %c0_60 = arith.constant 0 : index
      %c0_61 = arith.constant 0 : index
      %242 = vector.load %arg5[%c0_60, %c0_61] : memref<2x64xf32, #tpu.memory_space<vmem>>, vector<2x64xf32>
      tpu.vector_store %arg5[%c0_60, %c0_61], %241 {strides = array<i32>} : memref<2x64xf32, #tpu.memory_space<vmem>>, vector<2x64xf32>,
      %cst_62 = arith.constant 0.000000e+00 : f32
      %243 = vector.broadcast %cst_62 : f32 to vector<2x64xf32>
      %c0_63 = arith.constant 0 : index
      %c0_64 = arith.constant 0 : index
      %244 = vector.load %arg6[%c0_63, %c0_64] : memref<2x64xf32, #tpu.memory_space<vmem>>, vector<2x64xf32>
      tpu.vector_store %arg6[%c0_63, %c0_64], %243 {strides = array<i32>} : memref<2x64xf32, #tpu.memory_space<vmem>>, vector<2x64xf32>,
    } else {
    }
    %c0 = arith.constant 0 : index
    %c0_1 = arith.constant 0 : index
    %3 = vector.load %arg3[%c0, %c0_1] : memref<64x256xbf16, #tpu.memory_space<vmem>>, vector<64x256xbf16>
    %cst = arith.constant 0.000000e+00 : bf16
    %4 = vector.broadcast %cst : bf16 to vector<2x64xbf16>
    %c0_2 = arith.constant 0 : index
    %c0_3 = arith.constant 0 : index
    %5 = vector.load %arg5[%c0_2, %c0_3] : memref<2x64xf32, #tpu.memory_space<vmem>>, vector<2x64xf32>
    %c0_4 = arith.constant 0 : index
    %c0_5 = arith.constant 0 : index
    %6 = vector.load %arg6[%c0_4, %c0_5] : memref<2x64xf32, #tpu.memory_space<vmem>>, vector<2x64xf32>
    %c0_i32_6 = arith.constant 0 : i32
    %7 = arith.index_cast %c0_i32_6 : i32 to index
    %c0_7 = arith.constant 0 : index
    %c0_8 = arith.constant 0 : index
    %8 = vector.load %arg2[%7, %c0_7, %c0_8] : memref<8x2x256xbf16, #tpu.memory_space<vmem>>, vector<1x2x256xbf16>
    %9 = vector.shape_cast %8 : vector<1x2x256xbf16> to vector<2x256xbf16>
    %10 = arith.extf %9 : vector<2x256xbf16> to vector<2x256xf32>
    %11 = arith.truncf %5 : vector<2x64xf32> to vector<2x64xbf16>
    %cst_9 = arith.constant dense<0.000000e+00> : vector<2x256xf32>
    %12 = tpu.matmul %11, %3, %cst_9 {dimension_numbers = #tpu.dot_dimension_numbers<[1], [0], [0], [1], [0, 0, 1, 1], [], []>} : vector<2x64xbf16>, vector<64x256xbf16>, vector<2x256xf32> -> vector<2x256xf32>
    %13 = arith.addf %10, %12 : vector<2x256xf32>
    %14 = vector.extract_strided_slice %13 {offsets = [0, 0], sizes = [2, 192], strides = [1, 1]} : vector<2x256xf32> to vector<2x192xf32>
    %15 = arith.negf %14 : vector<2x192xf32>
    %16 = math.exp %15 : vector<2x192xf32>
    %cst_10 = arith.constant 1.000000e+00 : f32
    %17 = vector.broadcast %cst_10 : f32 to vector<2x192xf32>
    %18 = arith.addf %17, %16 : vector<2x192xf32>
    %19 = arith.divf %17, %18 : vector<2x192xf32>
    %20 = vector.extract_strided_slice %13 {offsets = [0, 192], sizes = [2, 64], strides = [1, 1]} : vector<2x256xf32> to vector<2x64xf32>
    %21 = math.tanh %20 : vector<2x64xf32>
    %22 = vector.extract_strided_slice %19 {offsets = [0, 64], sizes = [2, 64], strides = [1, 1]} : vector<2x192xf32> to vector<2x64xf32>
    %23 = arith.mulf %22, %6 : vector<2x64xf32>
    %24 = vector.extract_strided_slice %19 {offsets = [0, 0], sizes = [2, 64], strides = [1, 1]} : vector<2x192xf32> to vector<2x64xf32>
    %25 = arith.mulf %24, %21 : vector<2x64xf32>
    %26 = arith.addf %23, %25 : vector<2x64xf32>
    %27 = vector.extract_strided_slice %19 {offsets = [0, 128], sizes = [2, 64], strides = [1, 1]} : vector<2x192xf32> to vector<2x64xf32>
    %28 = math.tanh %26 : vector<2x64xf32>
    %29 = arith.mulf %27, %28 : vector<2x64xf32>
    %30 = arith.truncf %29 : vector<2x64xf32> to vector<2x64xbf16>
    %31 = tpu.concatenate %30, %4 in 1 : vector<2x64xbf16>, vector<2x64xbf16> -> vector<2x128xbf16>
    %32 = arith.index_cast %c0_i32_6 : i32 to index
    %c0_11 = arith.constant 0 : index
    %c0_12 = arith.constant 0 : index
    %33 = vector.load %arg4[%32, %c0_11, %c0_12] : memref<8x2x128xbf16, #tpu.memory_space<vmem>>, vector<1x2x128xbf16>
    %34 = vector.shape_cast %33 : vector<1x2x128xbf16> to vector<2x128xbf16>
    %35 = vector.shape_cast %31 : vector<2x128xbf16> to vector<1x2x128xbf16>
    tpu.vector_store %arg4[%32, %c0_11, %c0_12], %35 {strides = array<i32>} : memref<8x2x128xbf16, #tpu.memory_space<vmem>>, vector<1x2x128xbf16>,
    %c1_i32 = arith.constant 1 : i32
    %36 = arith.index_cast %c1_i32 : i32 to index
    %c0_13 = arith.constant 0 : index
    %c0_14 = arith.constant 0 : index
    %37 = vector.load %arg2[%36, %c0_13, %c0_14] : memref<8x2x256xbf16, #tpu.memory_space<vmem>>, vector<1x2x256xbf16>
    %38 = vector.shape_cast %37 : vector<1x2x256xbf16> to vector<2x256xbf16>
    %39 = arith.extf %38 : vector<2x256xbf16> to vector<2x256xf32>
    %40 = arith.truncf %29 : vector<2x64xf32> to vector<2x64xbf16>
    %cst_15 = arith.constant dense<0.000000e+00> : vector<2x256xf32>
    %41 = tpu.matmul %40, %3, %cst_15 {dimension_numbers = #tpu.dot_dimension_numbers<[1], [0], [0], [1], [0, 0, 1, 1], [], []>} : vector<2x64xbf16>, vector<64x256xbf16>, vector<2x256xf32> -> vector<2x256xf32>
    %42 = arith.addf %39, %41 : vector<2x256xf32>
    %43 = vector.extract_strided_slice %42 {offsets = [0, 0], sizes = [2, 192], strides = [1, 1]} : vector<2x256xf32> to vector<2x192xf32>
    %44 = arith.negf %43 : vector<2x192xf32>
    %45 = math.exp %44 : vector<2x192xf32>
    %cst_16 = arith.constant 1.000000e+00 : f32
    %46 = vector.broadcast %cst_16 : f32 to vector<2x192xf32>
    %47 = arith.addf %46, %45 : vector<2x192xf32>
    %48 = arith.divf %46, %47 : vector<2x192xf32>
    %49 = vector.extract_strided_slice %42 {offsets = [0, 192], sizes = [2, 64], strides = [1, 1]} : vector<2x256xf32> to vector<2x64xf32>
    %50 = math.tanh %49 : vector<2x64xf32>
    %51 = vector.extract_strided_slice %48 {offsets = [0, 64], sizes = [2, 64], strides = [1, 1]} : vector<2x192xf32> to vector<2x64xf32>
    %52 = arith.mulf %51, %26 : vector<2x64xf32>
    %53 = vector.extract_strided_slice %48 {offsets = [0, 0], sizes = [2, 64], strides = [1, 1]} : vector<2x192xf32> to vector<2x64xf32>
    %54 = arith.mulf %53, %50 : vector<2x64xf32>
    %55 = arith.addf %52, %54 : vector<2x64xf32>
    %56 = vector.extract_strided_slice %48 {offsets = [0, 128], sizes = [2, 64], strides = [1, 1]} : vector<2x192xf32> to vector<2x64xf32>
    %57 = math.tanh %55 : vector<2x64xf32>
    %58 = arith.mulf %56, %57 : vector<2x64xf32>
    %59 = arith.truncf %58 : vector<2x64xf32> to vector<2x64xbf16>
    %60 = tpu.concatenate %59, %4 in 1 : vector<2x64xbf16>, vector<2x64xbf16> -> vector<2x128xbf16>
    %61 = arith.index_cast %c1_i32 : i32 to index
    %c0_17 = arith.constant 0 : index
    %c0_18 = arith.constant 0 : index
    %62 = vector.load %arg4[%61, %c0_17, %c0_18] : memref<8x2x128xbf16, #tpu.memory_space<vmem>>, vector<1x2x128xbf16>
    %63 = vector.shape_cast %62 : vector<1x2x128xbf16> to vector<2x128xbf16>
    %64 = vector.shape_cast %60 : vector<2x128xbf16> to vector<1x2x128xbf16>
    tpu.vector_store %arg4[%61, %c0_17, %c0_18], %64 {strides = array<i32>} : memref<8x2x128xbf16, #tpu.memory_space<vmem>>, vector<1x2x128xbf16>,
    %c2_i32 = arith.constant 2 : i32
    %65 = arith.index_cast %c2_i32 : i32 to index
    %c0_19 = arith.constant 0 : index
    %c0_20 = arith.constant 0 : index
    %66 = vector.load %arg2[%65, %c0_19, %c0_20] : memref<8x2x256xbf16, #tpu.memory_space<vmem>>, vector<1x2x256xbf16>
    %67 = vector.shape_cast %66 : vector<1x2x256xbf16> to vector<2x256xbf16>
    %68 = arith.extf %67 : vector<2x256xbf16> to vector<2x256xf32>
    %69 = arith.truncf %58 : vector<2x64xf32> to vector<2x64xbf16>
    %cst_21 = arith.constant dense<0.000000e+00> : vector<2x256xf32>
    %70 = tpu.matmul %69, %3, %cst_21 {dimension_numbers = #tpu.dot_dimension_numbers<[1], [0], [0], [1], [0, 0, 1, 1], [], []>} : vector<2x64xbf16>, vector<64x256xbf16>, vector<2x256xf32> -> vector<2x256xf32>
    %71 = arith.addf %68, %70 : vector<2x256xf32>
    %72 = vector.extract_strided_slice %71 {offsets = [0, 0], sizes = [2, 192], strides = [1, 1]} : vector<2x256xf32> to vector<2x192xf32>
    %73 = arith.negf %72 : vector<2x192xf32>
    %74 = math.exp %73 : vector<2x192xf32>
    %cst_22 = arith.constant 1.000000e+00 : f32
    %75 = vector.broadcast %cst_22 : f32 to vector<2x192xf32>
    %76 = arith.addf %75, %74 : vector<2x192xf32>
    %77 = arith.divf %75, %76 : vector<2x192xf32>
    %78 = vector.extract_strided_slice %71 {offsets = [0, 192], sizes = [2, 64], strides = [1, 1]} : vector<2x256xf32> to vector<2x64xf32>
    %79 = math.tanh %78 : vector<2x64xf32>
    %80 = vector.extract_strided_slice %77 {offsets = [0, 64], sizes = [2, 64], strides = [1, 1]} : vector<2x192xf32> to vector<2x64xf32>
    %81 = arith.mulf %80, %55 : vector<2x64xf32>
    %82 = vector.extract_strided_slice %77 {offsets = [0, 0], sizes = [2, 64], strides = [1, 1]} : vector<2x192xf32> to vector<2x64xf32>
    %83 = arith.mulf %82, %79 : vector<2x64xf32>
    %84 = arith.addf %81, %83 : vector<2x64xf32>
    %85 = vector.extract_strided_slice %77 {offsets = [0, 128], sizes = [2, 64], strides = [1, 1]} : vector<2x192xf32> to vector<2x64xf32>
    %86 = math.tanh %84 : vector<2x64xf32>
    %87 = arith.mulf %85, %86 : vector<2x64xf32>
    %88 = arith.truncf %87 : vector<2x64xf32> to vector<2x64xbf16>
    %89 = tpu.concatenate %88, %4 in 1 : vector<2x64xbf16>, vector<2x64xbf16> -> vector<2x128xbf16>
    %90 = arith.index_cast %c2_i32 : i32 to index
    %c0_23 = arith.constant 0 : index
    %c0_24 = arith.constant 0 : index
    %91 = vector.load %arg4[%90, %c0_23, %c0_24] : memref<8x2x128xbf16, #tpu.memory_space<vmem>>, vector<1x2x128xbf16>
    %92 = vector.shape_cast %91 : vector<1x2x128xbf16> to vector<2x128xbf16>
    %93 = vector.shape_cast %89 : vector<2x128xbf16> to vector<1x2x128xbf16>
    tpu.vector_store %arg4[%90, %c0_23, %c0_24], %93 {strides = array<i32>} : memref<8x2x128xbf16, #tpu.memory_space<vmem>>, vector<1x2x128xbf16>,
    %c3_i32 = arith.constant 3 : i32
    %94 = arith.index_cast %c3_i32 : i32 to index
    %c0_25 = arith.constant 0 : index
    %c0_26 = arith.constant 0 : index
    %95 = vector.load %arg2[%94, %c0_25, %c0_26] : memref<8x2x256xbf16, #tpu.memory_space<vmem>>, vector<1x2x256xbf16>
    %96 = vector.shape_cast %95 : vector<1x2x256xbf16> to vector<2x256xbf16>
    %97 = arith.extf %96 : vector<2x256xbf16> to vector<2x256xf32>
    %98 = arith.truncf %87 : vector<2x64xf32> to vector<2x64xbf16>
    %cst_27 = arith.constant dense<0.000000e+00> : vector<2x256xf32>
    %99 = tpu.matmul %98, %3, %cst_27 {dimension_numbers = #tpu.dot_dimension_numbers<[1], [0], [0], [1], [0, 0, 1, 1], [], []>} : vector<2x64xbf16>, vector<64x256xbf16>, vector<2x256xf32> -> vector<2x256xf32>
    %100 = arith.addf %97, %99 : vector<2x256xf32>
    %101 = vector.extract_strided_slice %100 {offsets = [0, 0], sizes = [2, 192], strides = [1, 1]} : vector<2x256xf32> to vector<2x192xf32>
    %102 = arith.negf %101 : vector<2x192xf32>
    %103 = math.exp %102 : vector<2x192xf32>
    %cst_28 = arith.constant 1.000000e+00 : f32
    %104 = vector.broadcast %cst_28 : f32 to vector<2x192xf32>
    %105 = arith.addf %104, %103 : vector<2x192xf32>
    %106 = arith.divf %104, %105 : vector<2x192xf32>
    %107 = vector.extract_strided_slice %100 {offsets = [0, 192], sizes = [2, 64], strides = [1, 1]} : vector<2x256xf32> to vector<2x64xf32>
    %108 = math.tanh %107 : vector<2x64xf32>
    %109 = vector.extract_strided_slice %106 {offsets = [0, 64], sizes = [2, 64], strides = [1, 1]} : vector<2x192xf32> to vector<2x64xf32>
    %110 = arith.mulf %109, %84 : vector<2x64xf32>
    %111 = vector.extract_strided_slice %106 {offsets = [0, 0], sizes = [2, 64], strides = [1, 1]} : vector<2x192xf32> to vector<2x64xf32>
    %112 = arith.mulf %111, %108 : vector<2x64xf32>
    %113 = arith.addf %110, %112 : vector<2x64xf32>
    %114 = vector.extract_strided_slice %106 {offsets = [0, 128], sizes = [2, 64], strides = [1, 1]} : vector<2x192xf32> to vector<2x64xf32>
    %115 = math.tanh %113 : vector<2x64xf32>
    %116 = arith.mulf %114, %115 : vector<2x64xf32>
    %117 = arith.truncf %116 : vector<2x64xf32> to vector<2x64xbf16>
    %118 = tpu.concatenate %117, %4 in 1 : vector<2x64xbf16>, vector<2x64xbf16> -> vector<2x128xbf16>
    %119 = arith.index_cast %c3_i32 : i32 to index
    %c0_29 = arith.constant 0 : index
    %c0_30 = arith.constant 0 : index
    %120 = vector.load %arg4[%119, %c0_29, %c0_30] : memref<8x2x128xbf16, #tpu.memory_space<vmem>>, vector<1x2x128xbf16>
    %121 = vector.shape_cast %120 : vector<1x2x128xbf16> to vector<2x128xbf16>
    %122 = vector.shape_cast %118 : vector<2x128xbf16> to vector<1x2x128xbf16>
    tpu.vector_store %arg4[%119, %c0_29, %c0_30], %122 {strides = array<i32>} : memref<8x2x128xbf16, #tpu.memory_space<vmem>>, vector<1x2x128xbf16>,
    %c4_i32 = arith.constant 4 : i32
    %123 = arith.index_cast %c4_i32 : i32 to index
    %c0_31 = arith.constant 0 : index
    %c0_32 = arith.constant 0 : index
    %124 = vector.load %arg2[%123, %c0_31, %c0_32] : memref<8x2x256xbf16, #tpu.memory_space<vmem>>, vector<1x2x256xbf16>
    %125 = vector.shape_cast %124 : vector<1x2x256xbf16> to vector<2x256xbf16>
    %126 = arith.extf %125 : vector<2x256xbf16> to vector<2x256xf32>
    %127 = arith.truncf %116 : vector<2x64xf32> to vector<2x64xbf16>
    %cst_33 = arith.constant dense<0.000000e+00> : vector<2x256xf32>
    %128 = tpu.matmul %127, %3, %cst_33 {dimension_numbers = #tpu.dot_dimension_numbers<[1], [0], [0], [1], [0, 0, 1, 1], [], []>} : vector<2x64xbf16>, vector<64x256xbf16>, vector<2x256xf32> -> vector<2x256xf32>
    %129 = arith.addf %126, %128 : vector<2x256xf32>
    %130 = vector.extract_strided_slice %129 {offsets = [0, 0], sizes = [2, 192], strides = [1, 1]} : vector<2x256xf32> to vector<2x192xf32>
    %131 = arith.negf %130 : vector<2x192xf32>
    %132 = math.exp %131 : vector<2x192xf32>
    %cst_34 = arith.constant 1.000000e+00 : f32
    %133 = vector.broadcast %cst_34 : f32 to vector<2x192xf32>
    %134 = arith.addf %133, %132 : vector<2x192xf32>
    %135 = arith.divf %133, %134 : vector<2x192xf32>
    %136 = vector.extract_strided_slice %129 {offsets = [0, 192], sizes = [2, 64], strides = [1, 1]} : vector<2x256xf32> to vector<2x64xf32>
    %137 = math.tanh %136 : vector<2x64xf32>
    %138 = vector.extract_strided_slice %135 {offsets = [0, 64], sizes = [2, 64], strides = [1, 1]} : vector<2x192xf32> to vector<2x64xf32>
    %139 = arith.mulf %138, %113 : vector<2x64xf32>
    %140 = vector.extract_strided_slice %135 {offsets = [0, 0], sizes = [2, 64], strides = [1, 1]} : vector<2x192xf32> to vector<2x64xf32>
    %141 = arith.mulf %140, %137 : vector<2x64xf32>
    %142 = arith.addf %139, %141 : vector<2x64xf32>
    %143 = vector.extract_strided_slice %135 {offsets = [0, 128], sizes = [2, 64], strides = [1, 1]} : vector<2x192xf32> to vector<2x64xf32>
    %144 = math.tanh %142 : vector<2x64xf32>
    %145 = arith.mulf %143, %144 : vector<2x64xf32>
    %146 = arith.truncf %145 : vector<2x64xf32> to vector<2x64xbf16>
    %147 = tpu.concatenate %146, %4 in 1 : vector<2x64xbf16>, vector<2x64xbf16> -> vector<2x128xbf16>
    %148 = arith.index_cast %c4_i32 : i32 to index
    %c0_35 = arith.constant 0 : index
    %c0_36 = arith.constant 0 : index
    %149 = vector.load %arg4[%148, %c0_35, %c0_36] : memref<8x2x128xbf16, #tpu.memory_space<vmem>>, vector<1x2x128xbf16>
    %150 = vector.shape_cast %149 : vector<1x2x128xbf16> to vector<2x128xbf16>
    %151 = vector.shape_cast %147 : vector<2x128xbf16> to vector<1x2x128xbf16>
    tpu.vector_store %arg4[%148, %c0_35, %c0_36], %151 {strides = array<i32>} : memref<8x2x128xbf16, #tpu.memory_space<vmem>>, vector<1x2x128xbf16>,
    %c5_i32 = arith.constant 5 : i32
    %152 = arith.index_cast %c5_i32 : i32 to index
    %c0_37 = arith.constant 0 : index
    %c0_38 = arith.constant 0 : index
    %153 = vector.load %arg2[%152, %c0_37, %c0_38] : memref<8x2x256xbf16, #tpu.memory_space<vmem>>, vector<1x2x256xbf16>
    %154 = vector.shape_cast %153 : vector<1x2x256xbf16> to vector<2x256xbf16>
    %155 = arith.extf %154 : vector<2x256xbf16> to vector<2x256xf32>
    %156 = arith.truncf %145 : vector<2x64xf32> to vector<2x64xbf16>
    %cst_39 = arith.constant dense<0.000000e+00> : vector<2x256xf32>
    %157 = tpu.matmul %156, %3, %cst_39 {dimension_numbers = #tpu.dot_dimension_numbers<[1], [0], [0], [1], [0, 0, 1, 1], [], []>} : vector<2x64xbf16>, vector<64x256xbf16>, vector<2x256xf32> -> vector<2x256xf32>
    %158 = arith.addf %155, %157 : vector<2x256xf32>
    %159 = vector.extract_strided_slice %158 {offsets = [0, 0], sizes = [2, 192], strides = [1, 1]} : vector<2x256xf32> to vector<2x192xf32>
    %160 = arith.negf %159 : vector<2x192xf32>
    %161 = math.exp %160 : vector<2x192xf32>
    %cst_40 = arith.constant 1.000000e+00 : f32
    %162 = vector.broadcast %cst_40 : f32 to vector<2x192xf32>
    %163 = arith.addf %162, %161 : vector<2x192xf32>
    %164 = arith.divf %162, %163 : vector<2x192xf32>
    %165 = vector.extract_strided_slice %158 {offsets = [0, 192], sizes = [2, 64], strides = [1, 1]} : vector<2x256xf32> to vector<2x64xf32>
    %166 = math.tanh %165 : vector<2x64xf32>
    %167 = vector.extract_strided_slice %164 {offsets = [0, 64], sizes = [2, 64], strides = [1, 1]} : vector<2x192xf32> to vector<2x64xf32>
    %168 = arith.mulf %167, %142 : vector<2x64xf32>
    %169 = vector.extract_strided_slice %164 {offsets = [0, 0], sizes = [2, 64], strides = [1, 1]} : vector<2x192xf32> to vector<2x64xf32>
    %170 = arith.mulf %169, %166 : vector<2x64xf32>
    %171 = arith.addf %168, %170 : vector<2x64xf32>
    %172 = vector.extract_strided_slice %164 {offsets = [0, 128], sizes = [2, 64], strides = [1, 1]} : vector<2x192xf32> to vector<2x64xf32>
    %173 = math.tanh %171 : vector<2x64xf32>
    %174 = arith.mulf %172, %173 : vector<2x64xf32>
    %175 = arith.truncf %174 : vector<2x64xf32> to vector<2x64xbf16>
    %176 = tpu.concatenate %175, %4 in 1 : vector<2x64xbf16>, vector<2x64xbf16> -> vector<2x128xbf16>
    %177 = arith.index_cast %c5_i32 : i32 to index
    %c0_41 = arith.constant 0 : index
    %c0_42 = arith.constant 0 : index
    %178 = vector.load %arg4[%177, %c0_41, %c0_42] : memref<8x2x128xbf16, #tpu.memory_space<vmem>>, vector<1x2x128xbf16>
    %179 = vector.shape_cast %178 : vector<1x2x128xbf16> to vector<2x128xbf16>
    %180 = vector.shape_cast %176 : vector<2x128xbf16> to vector<1x2x128xbf16>
    tpu.vector_store %arg4[%177, %c0_41, %c0_42], %180 {strides = array<i32>} : memref<8x2x128xbf16, #tpu.memory_space<vmem>>, vector<1x2x128xbf16>,
    %c6_i32 = arith.constant 6 : i32
    %181 = arith.index_cast %c6_i32 : i32 to index
    %c0_43 = arith.constant 0 : index
    %c0_44 = arith.constant 0 : index
    %182 = vector.load %arg2[%181, %c0_43, %c0_44] : memref<8x2x256xbf16, #tpu.memory_space<vmem>>, vector<1x2x256xbf16>
    %183 = vector.shape_cast %182 : vector<1x2x256xbf16> to vector<2x256xbf16>
    %184 = arith.extf %183 : vector<2x256xbf16> to vector<2x256xf32>
    %185 = arith.truncf %174 : vector<2x64xf32> to vector<2x64xbf16>
    %cst_45 = arith.constant dense<0.000000e+00> : vector<2x256xf32>
    %186 = tpu.matmul %185, %3, %cst_45 {dimension_numbers = #tpu.dot_dimension_numbers<[1], [0], [0], [1], [0, 0, 1, 1], [], []>} : vector<2x64xbf16>, vector<64x256xbf16>, vector<2x256xf32> -> vector<2x256xf32>
    %187 = arith.addf %184, %186 : vector<2x256xf32>
    %188 = vector.extract_strided_slice %187 {offsets = [0, 0], sizes = [2, 192], strides = [1, 1]} : vector<2x256xf32> to vector<2x192xf32>
    %189 = arith.negf %188 : vector<2x192xf32>
    %190 = math.exp %189 : vector<2x192xf32>
    %cst_46 = arith.constant 1.000000e+00 : f32
    %191 = vector.broadcast %cst_46 : f32 to vector<2x192xf32>
    %192 = arith.addf %191, %190 : vector<2x192xf32>
    %193 = arith.divf %191, %192 : vector<2x192xf32>
    %194 = vector.extract_strided_slice %187 {offsets = [0, 192], sizes = [2, 64], strides = [1, 1]} : vector<2x256xf32> to vector<2x64xf32>
    %195 = math.tanh %194 : vector<2x64xf32>
    %196 = vector.extract_strided_slice %193 {offsets = [0, 64], sizes = [2, 64], strides = [1, 1]} : vector<2x192xf32> to vector<2x64xf32>
    %197 = arith.mulf %196, %171 : vector<2x64xf32>
    %198 = vector.extract_strided_slice %193 {offsets = [0, 0], sizes = [2, 64], strides = [1, 1]} : vector<2x192xf32> to vector<2x64xf32>
    %199 = arith.mulf %198, %195 : vector<2x64xf32>
    %200 = arith.addf %197, %199 : vector<2x64xf32>
    %201 = vector.extract_strided_slice %193 {offsets = [0, 128], sizes = [2, 64], strides = [1, 1]} : vector<2x192xf32> to vector<2x64xf32>
    %202 = math.tanh %200 : vector<2x64xf32>
    %203 = arith.mulf %201, %202 : vector<2x64xf32>
    %204 = arith.truncf %203 : vector<2x64xf32> to vector<2x64xbf16>
    %205 = tpu.concatenate %204, %4 in 1 : vector<2x64xbf16>, vector<2x64xbf16> -> vector<2x128xbf16>
    %206 = arith.index_cast %c6_i32 : i32 to index
    %c0_47 = arith.constant 0 : index
    %c0_48 = arith.constant 0 : index
    %207 = vector.load %arg4[%206, %c0_47, %c0_48] : memref<8x2x128xbf16, #tpu.memory_space<vmem>>, vector<1x2x128xbf16>
    %208 = vector.shape_cast %207 : vector<1x2x128xbf16> to vector<2x128xbf16>
    %209 = vector.shape_cast %205 : vector<2x128xbf16> to vector<1x2x128xbf16>
    tpu.vector_store %arg4[%206, %c0_47, %c0_48], %209 {strides = array<i32>} : memref<8x2x128xbf16, #tpu.memory_space<vmem>>, vector<1x2x128xbf16>,
    %c7_i32 = arith.constant 7 : i32
    %210 = arith.index_cast %c7_i32 : i32 to index
    %c0_49 = arith.constant 0 : index
    %c0_50 = arith.constant 0 : index
    %211 = vector.load %arg2[%210, %c0_49, %c0_50] : memref<8x2x256xbf16, #tpu.memory_space<vmem>>, vector<1x2x256xbf16>
    %212 = vector.shape_cast %211 : vector<1x2x256xbf16> to vector<2x256xbf16>
    %213 = arith.extf %212 : vector<2x256xbf16> to vector<2x256xf32>
    %214 = arith.truncf %203 : vector<2x64xf32> to vector<2x64xbf16>
    %cst_51 = arith.constant dense<0.000000e+00> : vector<2x256xf32>
    %215 = tpu.matmul %214, %3, %cst_51 {dimension_numbers = #tpu.dot_dimension_numbers<[1], [0], [0], [1], [0, 0, 1, 1], [], []>} : vector<2x64xbf16>, vector<64x256xbf16>, vector<2x256xf32> -> vector<2x256xf32>
    %216 = arith.addf %213, %215 : vector<2x256xf32>
    %217 = vector.extract_strided_slice %216 {offsets = [0, 0], sizes = [2, 192], strides = [1, 1]} : vector<2x256xf32> to vector<2x192xf32>
    %218 = arith.negf %217 : vector<2x192xf32>
    %219 = math.exp %218 : vector<2x192xf32>
    %cst_52 = arith.constant 1.000000e+00 : f32
    %220 = vector.broadcast %cst_52 : f32 to vector<2x192xf32>
    %221 = arith.addf %220, %219 : vector<2x192xf32>
    %222 = arith.divf %220, %221 : vector<2x192xf32>
    %223 = vector.extract_strided_slice %216 {offsets = [0, 192], sizes = [2, 64], strides = [1, 1]} : vector<2x256xf32> to vector<2x64xf32>
    %224 = math.tanh %223 : vector<2x64xf32>
    %225 = vector.extract_strided_slice %222 {offsets = [0, 64], sizes = [2, 64], strides = [1, 1]} : vector<2x192xf32> to vector<2x64xf32>
    %226 = arith.mulf %225, %200 : vector<2x64xf32>
    %227 = vector.extract_strided_slice %222 {offsets = [0, 0], sizes = [2, 64], strides = [1, 1]} : vector<2x192xf32> to vector<2x64xf32>
    %228 = arith.mulf %227, %224 : vector<2x64xf32>
    %229 = arith.addf %226, %228 : vector<2x64xf32>
    %230 = vector.extract_strided_slice %222 {offsets = [0, 128], sizes = [2, 64], strides = [1, 1]} : vector<2x192xf32> to vector<2x64xf32>
    %231 = math.tanh %229 : vector<2x64xf32>
    %232 = arith.mulf %230, %231 : vector<2x64xf32>
    %233 = arith.truncf %232 : vector<2x64xf32> to vector<2x64xbf16>
    %234 = tpu.concatenate %233, %4 in 1 : vector<2x64xbf16>, vector<2x64xbf16> -> vector<2x128xbf16>
    %235 = arith.index_cast %c7_i32 : i32 to index
    %c0_53 = arith.constant 0 : index
    %c0_54 = arith.constant 0 : index
    %236 = vector.load %arg4[%235, %c0_53, %c0_54] : memref<8x2x128xbf16, #tpu.memory_space<vmem>>, vector<1x2x128xbf16>
    %237 = vector.shape_cast %236 : vector<1x2x128xbf16> to vector<2x128xbf16>
    %238 = vector.shape_cast %234 : vector<2x128xbf16> to vector<1x2x128xbf16>
    tpu.vector_store %arg4[%235, %c0_53, %c0_54], %238 {strides = array<i32>} : memref<8x2x128xbf16, #tpu.memory_space<vmem>>, vector<1x2x128xbf16>,
    %c8_i32 = arith.constant 8 : i32
    %c0_55 = arith.constant 0 : index
    %c0_56 = arith.constant 0 : index
    %239 = vector.load %arg5[%c0_55, %c0_56] : memref<2x64xf32, #tpu.memory_space<vmem>>, vector<2x64xf32>
    tpu.vector_store %arg5[%c0_55, %c0_56], %232 {strides = array<i32>} : memref<2x64xf32, #tpu.memory_space<vmem>>, vector<2x64xf32>,
    %c0_57 = arith.constant 0 : index
    %c0_58 = arith.constant 0 : index
    %240 = vector.load %arg6[%c0_57, %c0_58] : memref<2x64xf32, #tpu.memory_space<vmem>>, vector<2x64xf32>
    tpu.vector_store %arg6[%c0_57, %c0_58], %229 {strides = array<i32>} : memref<2x64xf32, #tpu.memory_space<vmem>>, vector<2x64xf32>,
    return
  }
  func.func @transform_0(%arg0: i32, %arg1: i32) -> (i32, i32, i32) {
    %c0_i32 = arith.constant 0 : i32
    %c0_i32_0 = arith.constant 0 : i32
    return %arg1, %arg0, %c0_i32 : i32, i32, i32
  }
  func.func @transform_1(%arg0: i32, %arg1: i32) -> (i32, i32) {
    %c0_i32 = arith.constant 0 : i32
    %c0_i32_0 = arith.constant 0 : i32
    %c0_i32_1 = arith.constant 0 : i32
    return %c0_i32, %c0_i32_0 : i32, i32
  }
  func.func @transform_2(%arg0: i32, %arg1: i32) -> (i32, i32, i32) {
    %c0_i32 = arith.constant 0 : i32
    %c0_i32_0 = arith.constant 0 : i32
    return %arg1, %arg0, %c0_i32 : i32, i32, i32
  }
}

module attributes {stable_mosaic.version = 11 : i64} {
  func.func @_matmul_bias_kernel(%arg0: i32, %arg1: memref<16x128xbf16, #tpu.memory_space<vmem>>, %arg2: memref<128x256xbf16, #tpu.memory_space<vmem>>, %arg3: memref<1x256xf32, #tpu.memory_space<vmem>>, %arg4: memref<16x256xbf16, #tpu.memory_space<vmem>>) attributes {dimension_semantics = [#tpu.dimension_semantics<parallel>], iteration_bounds = array<i64: 1>, scalar_prefetch = 0 : i64, scratch_operands = 0 : i64, tpu.core_type = #tpu.core_type<tc>, window_params = [{transform_indices = @transform_0, window_bounds = array<i64: 16, 128>}, {pipeline_mode = #tpu.pipeline_mode<synchronous>, transform_indices = @transform_1, window_bounds = array<i64: 128, 256>}, {pipeline_mode = #tpu.pipeline_mode<synchronous>, transform_indices = @transform_2, window_bounds = array<i64: 1, 256>}, {transform_indices = @transform_3, window_bounds = array<i64: 16, 256>}]} {
    %c0 = arith.constant 0 : index
    %c0_0 = arith.constant 0 : index
    %0 = vector.load %arg1[%c0, %c0_0] : memref<16x128xbf16, #tpu.memory_space<vmem>>, vector<16x128xbf16>
    %c0_1 = arith.constant 0 : index
    %c0_2 = arith.constant 0 : index
    %1 = vector.load %arg2[%c0_1, %c0_2] : memref<128x256xbf16, #tpu.memory_space<vmem>>, vector<128x256xbf16>
    %cst = arith.constant dense<0.000000e+00> : vector<16x256xf32>
    %2 = tpu.matmul %0, %1, %cst {dimension_numbers = #tpu.dot_dimension_numbers<[1], [0], [0], [1], [0, 0, 1, 1], [], []>} : vector<16x128xbf16>, vector<128x256xbf16>, vector<16x256xf32> -> vector<16x256xf32>
    %c0_3 = arith.constant 0 : index
    %c0_4 = arith.constant 0 : index
    %3 = vector.load %arg3[%c0_3, %c0_4] : memref<1x256xf32, #tpu.memory_space<vmem>>, vector<1x256xf32>
    %4 = vector.broadcast %3 : vector<1x256xf32> to vector<16x256xf32>
    %5 = arith.addf %2, %4 : vector<16x256xf32>
    %6 = arith.truncf %5 : vector<16x256xf32> to vector<16x256xbf16>
    %c0_5 = arith.constant 0 : index
    %c0_6 = arith.constant 0 : index
    %7 = vector.load %arg4[%c0_5, %c0_6] : memref<16x256xbf16, #tpu.memory_space<vmem>>, vector<16x256xbf16>
    tpu.vector_store %arg4[%c0_5, %c0_6], %6 {strides = array<i32>} : memref<16x256xbf16, #tpu.memory_space<vmem>>, vector<16x256xbf16>,
    return
  }
  func.func @transform_0(%arg0: i32) -> (i32, i32) {
    %c0_i32 = arith.constant 0 : i32
    %c0_i32_0 = arith.constant 0 : i32
    return %arg0, %c0_i32 : i32, i32
  }
  func.func @transform_1(%arg0: i32) -> (i32, i32) {
    %c0_i32 = arith.constant 0 : i32
    %c0_i32_0 = arith.constant 0 : i32
    %c0_i32_1 = arith.constant 0 : i32
    return %c0_i32, %c0_i32_0 : i32, i32
  }
  func.func @transform_2(%arg0: i32) -> (i32, i32) {
    %c0_i32 = arith.constant 0 : i32
    %c0_i32_0 = arith.constant 0 : i32
    %c0_i32_1 = arith.constant 0 : i32
    return %c0_i32, %c0_i32_0 : i32, i32
  }
  func.func @transform_3(%arg0: i32) -> (i32, i32) {
    %c0_i32 = arith.constant 0 : i32
    %c0_i32_0 = arith.constant 0 : i32
    return %arg0, %c0_i32 : i32, i32
  }
}

module attributes {stable_mosaic.version = 11 : i64} {
  func.func @_matmul_bias_kernel(%arg0: i32, %arg1: memref<2x128xbf16, #tpu.memory_space<vmem>>, %arg2: memref<128x4xbf16, #tpu.memory_space<vmem>>, %arg3: memref<1x4xf32, #tpu.memory_space<vmem>>, %arg4: memref<2x4xf32, #tpu.memory_space<vmem>>) attributes {dimension_semantics = [#tpu.dimension_semantics<parallel>], iteration_bounds = array<i64: 1>, scalar_prefetch = 0 : i64, scratch_operands = 0 : i64, tpu.core_type = #tpu.core_type<tc>, window_params = [{transform_indices = @transform_0, window_bounds = array<i64: 2, 128>}, {pipeline_mode = #tpu.pipeline_mode<synchronous>, transform_indices = @transform_1, window_bounds = array<i64: 128, 4>}, {pipeline_mode = #tpu.pipeline_mode<synchronous>, transform_indices = @transform_2, window_bounds = array<i64: 1, 4>}, {transform_indices = @transform_3, window_bounds = array<i64: 2, 4>}]} {
    %c0 = arith.constant 0 : index
    %c0_0 = arith.constant 0 : index
    %0 = vector.load %arg1[%c0, %c0_0] : memref<2x128xbf16, #tpu.memory_space<vmem>>, vector<2x128xbf16>
    %c0_1 = arith.constant 0 : index
    %c0_2 = arith.constant 0 : index
    %1 = vector.load %arg2[%c0_1, %c0_2] : memref<128x4xbf16, #tpu.memory_space<vmem>>, vector<128x4xbf16>
    %cst = arith.constant dense<0.000000e+00> : vector<2x4xf32>
    %2 = tpu.matmul %0, %1, %cst {dimension_numbers = #tpu.dot_dimension_numbers<[1], [0], [0], [1], [0, 0, 1, 1], [], []>} : vector<2x128xbf16>, vector<128x4xbf16>, vector<2x4xf32> -> vector<2x4xf32>
    %c0_3 = arith.constant 0 : index
    %c0_4 = arith.constant 0 : index
    %3 = vector.load %arg3[%c0_3, %c0_4] : memref<1x4xf32, #tpu.memory_space<vmem>>, vector<1x4xf32>
    %4 = vector.broadcast %3 : vector<1x4xf32> to vector<2x4xf32>
    %5 = arith.addf %2, %4 : vector<2x4xf32>
    %c0_5 = arith.constant 0 : index
    %c0_6 = arith.constant 0 : index
    %6 = vector.load %arg4[%c0_5, %c0_6] : memref<2x4xf32, #tpu.memory_space<vmem>>, vector<2x4xf32>
    tpu.vector_store %arg4[%c0_5, %c0_6], %5 {strides = array<i32>} : memref<2x4xf32, #tpu.memory_space<vmem>>, vector<2x4xf32>,
    return
  }
  func.func @transform_0(%arg0: i32) -> (i32, i32) {
    %c0_i32 = arith.constant 0 : i32
    %c0_i32_0 = arith.constant 0 : i32
    return %arg0, %c0_i32 : i32, i32
  }
  func.func @transform_1(%arg0: i32) -> (i32, i32) {
    %c0_i32 = arith.constant 0 : i32
    %c0_i32_0 = arith.constant 0 : i32
    %c0_i32_1 = arith.constant 0 : i32
    return %c0_i32, %c0_i32_0 : i32, i32
  }
  func.func @transform_2(%arg0: i32) -> (i32, i32) {
    %c0_i32 = arith.constant 0 : i32
    %c0_i32_0 = arith.constant 0 : i32
    %c0_i32_1 = arith.constant 0 : i32
    return %c0_i32, %c0_i32_0 : i32, i32
  }
  func.func @transform_3(%arg0: i32) -> (i32, i32) {
    %c0_i32 = arith.constant 0 : i32
    %c0_i32_0 = arith.constant 0 : i32
    return %arg0, %c0_i32 : i32, i32
  }
}

</mosaic_0001>

<bundles_post_ra>
// kernel: _lambda_.5
= control target key start
LH: loop header
LB: loop body
LE: loop exit
PB: predicated region body
PF: predicated region fallthrough
CT: control target
= control target key end

     0   :  { %v141_v1 = vmov 0   ;;  %vm58_vm0 = vcmask 261120   ;;  %v23_v6 = vlaneseq  ;;  %s186_s1 = inlined_call_operand.vmem [shape: bf16[32,256], index: 1, kind: input, shape index: {}]   ;;  %s187_s0 = inlined_call_operand.vmem [shape: bf16[16,32], index: 0, kind: input, shape index: {}]   ;;  %s188_s2 = inlined_call_operand.vmem [shape: f32[1,256], index: 2, kind: input, shape index: {}]   ;;  %s189_s3 = inlined_call_operand.vmem [shape: bf16[16,256], index: 3, kind: output, shape index: {}]  }
   0x1   :  { %v134_v0 = vld [vmem:[%s186_s1 + $0x14] ss:$8 sps:$4 sm:$0xff]   ;;  %94 = vmatprep.mubr.bf16.mxu0 %v141_v1  ;;  %v136_v2 = vld [vmem:[%s186_s1 + $0x10] ss:$8 sps:$4 sm:$0xff]   ;;  %v137_v3 = vld [vmem:[%s186_s1 + $0x4] ss:$8 sps:$4 sm:$0xff]  }
   0x2   :  { %74 = vmatprep.subr.bf16.mxu0 %v134_v0  ;;  %v139_v4 = vld [vmem:[%s186_s1] ss:$8 sps:$4 sm:$0xff]   ;;  %v24_v7 = vshrl.u32 %v23_v6, 7 }
   0x3   :  { %75 = vmatpush1.bf16.msra.mxu0 %v136_v2  ;;  %v140_v5 = vld [vmem:[%s187_s0] sm:$0xff]  }
   0x4   :  { %76 = vmatprep.subr.bf16.mxu0 %v137_v3  ;;  %v25_v8 = vsub.s32 0, %v24_v7  ;;  %v29_v9 = vsub.s32 1, %v24_v7  ;;  %v21_v10 = vld [vmem:[%s188_s2] sm:$0x3] }
   0x6   :  { %v26_v11 = vrot.slane %v21_v10, %v25_v8  ;;  %v30_v12 = vrot.slane %v21_v10, %v29_v9 }
   0x7   :  { %77 = vmatpush1.bf16.msra.mxu0 %v139_v4 }
   0xa   :  { %128 = vmatmul.mubr.msk.bf16.vlgmr.msra.gmra.mxu0 %vm58_vm0, %v140_v5 }
  0xca   :  { %v96_v13 = vpop.f32.mrf.mxu0 }
  0xcb   :  { %v97_v15 = vadd.f32 %v96_v13, %v26_v11 }
  0xcc   :  { %v98_v14 = vpop.f32.mrf.mxu0 }
  0xcd   :  { %v99_v16 = vadd.f32 %v98_v14, %v30_v12 }
  0xce   :  { %v100_v17 = vpop.f32.mrf.mxu0 }
  0xcf   :  { %v131_v18 = vpack.c.bf16 %v99_v16, %v97_v15  ;;  %v101_v20 = vadd.f32 %v100_v17, %v26_v11 }
  0xd0   :  { %v102_v19 = vpop.f32.mrf.mxu0 }
  0xd1   :  { %117 = vst [vmem:[%s189_s3] sm:$0xff] %v131_v18  ;;  %v103_v21 = vadd.f32 %v102_v19, %v30_v12 }
  0xd3   :  { %v132_v22 = vpack.c.bf16 %v103_v21, %v101_v20 }
  0xd5   :  { %118 = vst [vmem:[%s189_s3 + $0x8] sm:$0xff] %v132_v22 }

// kernel: _lambda_.7
= control target key start
LH: loop header
LB: loop body
LE: loop exit
PB: predicated region body
PF: predicated region fallthrough
CT: control target
= control target key end

     0   :  { %v239_v1 = vmov 0   ;;  %v35_v18 = vlaneseq  ;;  %s320_s1 = inlined_call_operand.vmem [shape: bf16[128,256], index: 1, kind: input, shape index: {}]   ;;  %s321_s0 = inlined_call_operand.vmem [shape: bf16[16,128], index: 0, kind: input, shape index: {}]   ;;  %s322_s2 = inlined_call_operand.vmem [shape: f32[1,256], index: 2, kind: input, shape index: {}]   ;;  %s323_s3 = inlined_call_operand.vmem [shape: bf16[16,256], index: 3, kind: output, shape index: {}]  }
   0x1   :  { %v214_v0 = vld [vmem:[%s320_s1 + $0x74] ss:$8 sps:$4 sm:$0xff]   ;;  %163 = vmatprep.mubr.bf16.mxu0 %v239_v1  ;;  %v216_v2 = vld [vmem:[%s320_s1 + $0x70] ss:$8 sps:$4 sm:$0xff]   ;;  %v217_v3 = vld [vmem:[%s320_s1 + $0x64] ss:$8 sps:$4 sm:$0xff]  }
   0x2   :  { %131 = vmatprep.subr.bf16.mxu0 %v214_v0  ;;  %v219_v4 = vld [vmem:[%s320_s1 + $0x60] ss:$8 sps:$4 sm:$0xff]   ;;  %v220_v5 = vld [vmem:[%s320_s1 + $0x54] ss:$8 sps:$4 sm:$0xff]   ;;  %v222_v6 = vld [vmem:[%s320_s1 + $0x50] ss:$8 sps:$4 sm:$0xff]  }
   0x3   :  { %132 = vmatpush1.bf16.msra.mxu0 %v216_v2  ;;  %v223_v7 = vld [vmem:[%s320_s1 + $0x44] ss:$8 sps:$4 sm:$0xff]   ;;  %v225_v8 = vld [vmem:[%s320_s1 + $0x40] ss:$8 sps:$4 sm:$0xff]   ;;  %v226_v9 = vld [vmem:[%s320_s1 + $0x34] ss:$8 sps:$4 sm:$0xff]  }
   0x4   :  { %133 = vmatprep.subr.bf16.mxu0 %v217_v3  ;;  %v228_v10 = vld [vmem:[%s320_s1 + $0x30] ss:$8 sps:$4 sm:$0xff]   ;;  %v229_v11 = vld [vmem:[%s320_s1 + $0x24] ss:$8 sps:$4 sm:$0xff]   ;;  %v231_v12 = vld [vmem:[%s320_s1 + $0x20] ss:$8 sps:$4 sm:$0xff]  }
   0x5   :  { %v232_v13 = vld [vmem:[%s320_s1 + $0x14] ss:$8 sps:$4 sm:$0xff]   ;;  %v234_v14 = vld [vmem:[%s320_s1 + $0x10] ss:$8 sps:$4 sm:$0xff]   ;;  %v235_v15 = vld [vmem:[%s320_s1 + $0x4] ss:$8 sps:$4 sm:$0xff]  }
   0x6   :  { %v237_v16 = vld [vmem:[%s320_s1] ss:$8 sps:$4 sm:$0xff]   ;;  %v36_v19 = vshrl.u32 %v35_v18, 7 }
   0x7   :  { %134 = vmatpush1.bf16.msra.mxu0 %v219_v4  ;;  %v238_v17 = vld [vmem:[%s321_s0] sm:$0xff]  }
   0x8   :  { %135 = vmatprep.subr.bf16.mxu0 %v220_v5  ;;  %v37_v20 = vsub.s32 0, %v36_v19  ;;  %v41_v21 = vsub.s32 1, %v36_v19  ;;  %v33_v22 = vld [vmem:[%s322_s2] sm:$0x3] }
   0xa   :  { %v38_v23 = vrot.slane %v33_v22, %v37_v20  ;;  %v42_v24 = vrot.slane %v33_v22, %v41_v21 }
   0xb   :  { %136 = vmatpush1.bf16.msra.mxu0 %v222_v6 }
   0xc   :  { %137 = vmatprep.subr.bf16.mxu0 %v223_v7 }
   0xf   :  { %138 = vmatpush1.bf16.msra.mxu0 %v225_v8 }
  0x10   :  { %139 = vmatprep.subr.bf16.mxu0 %v226_v9 }
  0x13   :  { %140 = vmatpush1.bf16.msra.mxu0 %v228_v10 }
  0x14   :  { %141 = vmatprep.subr.bf16.mxu0 %v229_v11 }
  0x17   :  { %142 = vmatpush1.bf16.msra.mxu0 %v231_v12 }
  0x18   :  { %143 = vmatprep.subr.bf16.mxu0 %v232_v13 }
  0x1b   :  { %144 = vmatpush1.bf16.msra.mxu0 %v234_v14 }
  0x1c   :  { %145 = vmatprep.subr.bf16.mxu0 %v235_v15 }
  0x1f   :  { %146 = vmatpush1.bf16.msra.mxu0 %v237_v16 }
  0x22   :  { %164 = vmatmul.mubr.bf16.vlgmr.msra.gmra.mxu0 %v238_v17 }
  0xe2   :  { %v165_v25 = vpop.f32.mrf.mxu0 }
  0xe3   :  { %v166_v27 = vadd.f32 %v165_v25, %v38_v23 }
  0xe4   :  { %v167_v26 = vpop.f32.mrf.mxu0 }
  0xe5   :  { %v168_v28 = vadd.f32 %v167_v26, %v42_v24 }
  0xe6   :  { %v169_v29 = vpop.f32.mrf.mxu0 }
  0xe7   :  { %v211_v30 = vpack.c.bf16 %v168_v28, %v166_v27  ;;  %v170_v32 = vadd.f32 %v169_v29, %v38_v23 }
  0xe8   :  { %v171_v31 = vpop.f32.mrf.mxu0 }
  0xe9   :  { %186 = vst [vmem:[%s323_s3] sm:$0xff] %v211_v30  ;;  %v172_v33 = vadd.f32 %v171_v31, %v42_v24 }
  0xeb   :  { %v212_v34 = vpack.c.bf16 %v172_v33, %v170_v32 }
  0xed   :  { %187 = vst [vmem:[%s323_s3 + $0x8] sm:$0xff] %v212_v34 }

// kernel: _lambda_.9
= control target key start
LH: loop header
LB: loop body
LE: loop exit
PB: predicated region body
PF: predicated region fallthrough
CT: control target
= control target key end

     0   :  { %v215_v1 = vmov 0.0   ;;  %vm216_vm0 = vmmov 0   ;;  %s271_s0 = inlined_call_operand.vmem [shape: bf16[2,128], index: 0, kind: input, shape index: {}]   ;;  %s272_s1 = inlined_call_operand.vmem [shape: bf16[128,4], index: 1, kind: input, shape index: {}]   ;;  %s273_s2 = inlined_call_operand.vmem [shape: f32[1,4], index: 2, kind: input, shape index: {}]   ;;  %s274_s3 = inlined_call_operand.hbm [shape: f32[2,4], index: 3, kind: output, shape index: {}]  }
   0x1   :  { %v185_v0 = vld [vmem:[%s272_s1 + $0x38] sm:$0xff]   ;;  %162 = vmatprep.subr.bf16.mxu0 %v215_v1  ;;  %v186_v2 = vld [vmem:[%s272_s1 + $0x30] sm:$0xff]   ;;  %178 = vmatprep.mubr.msk.bf16.mxu0 %vm216_vm0, %v215_v1  ;;  %v187_v3 = vld [vmem:[%s272_s1 + $0x28] sm:$0xff]  }
   0x2   :  { %163 = vmatpush3.bf16.msra.mxu0 %v185_v0 }
   0x3   :  { %164 = vmatprep.subr.bf16.mxu0 %v215_v1 }
   0x6   :  { %165 = vmatpush3.bf16.msra.mxu0 %v186_v2 }
   0x7   :  { %166 = vmatprep.subr.bf16.mxu0 %v215_v1 }
   0x8   :  { %8 = vsyncpa [#allocation3], 0  ;;  %v188_v4 = vld [vmem:[%s272_s1 + $0x20] sm:$0xff]   ;;  %v189_v5 = vld [vmem:[%s272_s1 + $0x18] sm:$0xff]   ;;  %s217_s5 = smov [#allocation2]   ;;  %vm128_vm1 = vcmask 25600  }
   0x9   :  { %v190_v6 = vld [vmem:[%s272_s1 + $0x10] sm:$0xff]   ;;  %v191_v7 = vld [vmem:[%s272_s1 + $0x8] sm:$0xff]   ;;  %v192_v8 = vld [vmem:[%s272_s1] sm:$0xff]   ;;  %s136_s6 = sshll.u32 %s217_s5, 4  ;;  %s137_s6 = int_to_ptr.vmem [resolvable:$true] %s136_s6 }
   0xa   :  { %167 = vmatpush3.bf16.msra.mxu0 %v187_v3  ;;  %v16_v9 = vld [vmem:[%s271_s0] sm:$0x1]  ;;  %s193_s1 = scalar_lea.vmem %s137_s6, 32  ;;  %p198_p1 = scmp.lt.s32.totalorder %s137_s6, %s137_s6 }
   0xb   :  { %168 = vmatprep.subr.bf16.mxu0 %v215_v1  ;;  %v144_v10 = vld [vmem:[%s273_s2] ss:$0 sm:$0xff]  ;;  %p194_p0 = scmp.ne.s32.totalorder %s137_s6, %s193_s1  ;;  %p199_p2 = scmp.lt.s32.totalorder %s193_s1, %s193_s1 }
   0xd   :  { %p200_p3 = por %p199_p2, %p198_p1 }
   0xe   :  { %169 = vmatpush3.bf16.msra.mxu0 %v188_v4 }
   0xf   :  { %170 = vmatprep.subr.bf16.mxu0 %v215_v1  ;;  %p201_p4 = pnand %p200_p3, %p194_p0 }
  0x12   :  { %171 = vmatpush3.bf16.msra.mxu0 %v189_v5 }
  0x13   :  { %172 = vmatprep.subr.bf16.mxu0 %v215_v1 }
  0x16   :  { %173 = vmatpush3.bf16.msra.mxu0 %v190_v6 }
  0x17   :  { %174 = vmatprep.subr.bf16.mxu0 %v215_v1 }
  0x1a   :  { %175 = vmatpush3.bf16.msra.mxu0 %v191_v7 }
  0x1b   :  { %176 = vmatprep.subr.bf16.mxu0 %v215_v1 }
  0x1e   :  { %177 = vmatpush3.bf16.msra.mxu0 %v192_v8 }
  0x21   :  { %179 = vmatmul.mubr.bf16.vlgmr.msra.gmra.mxu0 %v16_v9 }
  0xe1   :  { %v122_v11 = vpop.f32.mrf.mxu0 }
  0xe2   :  { %v123_v12 = vadd.f32 %v144_v10, %v122_v11 }
  0xe3   :  { %v180_v13 = vpop.f32.mrf.mxu0 }
  0xe4   :  { %129 = vst.msk [vmem:[#allocation2] sm:$0x3] %vm128_vm1, %v123_v12 }
  0xe5   :  { %v125_v14 = vpop.f32.mrf.mxu0 }
  0xe6   :  { %204 = shalt.err (!%p201_p4)
}
  0xe7   :  { %139 = dma.vmem_to_hbm [thread:$0]  %s137_s6, 32, %s274_s3, [#allocation3]   ;;  %v181_v15 = vpop.f32.mrf.mxu0 }
  0xe8   :  { %213 = dma.done.wait [#allocation3], 32  }
  0xe9   :  { %214 = vsyncadd [#allocation3], 4294967264 }
  0xea   :  { %143 = vsyncpa [#allocation3], 1 }

// kernel: _lambda_.6
= control target key start
LH: loop header
LB: loop body
LE: loop exit
PB: predicated region body
PF: predicated region fallthrough
CT: control target
= control target key end

     0   :  { %vm16_vm0 = vcmask 517120   ;;  %v955_v1 = vmov 0   ;;  %v956_v2 = vmov 0.0   ;;  %vm72_vm1 = vcmask 523264   ;;  %s958_s26 = smov 64   ;;  %s1191_s1 = inlined_call_operand.vmem [shape: bf16[64,256], index: 1, kind: input, shape index: {}]   ;;  %s1192_s0 = inlined_call_operand.vmem [shape: bf16[8,2,256], index: 0, kind: input, shape index: {}]   ;;  %s1193_s2 = inlined_call_operand.vmem [shape: bf16[8,2,128], index: 2, kind: output, shape index: {}]  }
   0x1   :  { %v977_v0 = vld [vmem:[%s1191_s1 + $0x34] ss:$8 sps:$4 sm:$0xff]   ;;  %108 = vmatprep.mubr.bf16.mxu0 %v955_v1  ;;  %17 = vst.msk [vmem:[#allocation2] sm:$0x3] %vm16_vm0, %v956_v2  ;;  %18 = vst.msk [vmem:[#allocation3] sm:$0x3] %vm16_vm0, %v956_v2  ;;  %211 = vmatprep.mubr.bf16.mxu1 %v955_v1  ;;  %v123_v14 = vlaneseq }
   0x2   :  { %v986_v3 = vld [vmem:[%s1191_s1 + $0x30] ss:$8 sps:$4 sm:$0xff]   ;;  %84 = vmatprep.subr.bf16.mxu0 %v977_v0  ;;  %v992_v4 = vld [vmem:[%s1191_s1 + $0x24] ss:$8 sps:$4 sm:$0xff]   ;;  %187 = vmatprep.subr.bf16.mxu1 %v977_v0  ;;  %v999_v5 = vld [vmem:[%s1191_s1 + $0x20] ss:$8 sps:$4 sm:$0xff]  }
   0x3   :  { %85 = vmatpush1.bf16.msra.mxu0 %v986_v3  ;;  %188 = vmatpush1.bf16.msra.mxu1 %v986_v3  ;;  %v1006_v6 = vld [vmem:[%s1191_s1 + $0x14] ss:$8 sps:$4 sm:$0xff]   ;;  %v1013_v7 = vld [vmem:[%s1191_s1 + $0x10] ss:$8 sps:$4 sm:$0xff]   ;;  %v1020_v8 = vld [vmem:[%s1191_s1 + $0x4] ss:$8 sps:$4 sm:$0xff]  }
   0x4   :  { %86 = vmatprep.subr.bf16.mxu0 %v992_v4  ;;  %189 = vmatprep.subr.bf16.mxu1 %v992_v4  ;;  %v1027_v9 = vld [vmem:[%s1191_s1] ss:$8 sps:$4 sm:$0xff]   ;;  %v957_v12 = vmov 1983009808   ;;  %v124_v16 = vshrl.u32 %v123_v14, 7 }
   0x5   :  { %v121_v13 = vunpack.c.l.s4 %v957_v12  ;;  %v29_v18 = vld [vmem:[%s1192_s0] sm:$0x3]  ;;  %v847_v47 = vld [vmem:[%s1192_s0 + $0x2] sm:$0x3] }
   0x6   :  { %v30_v22 = vunpack.c.l.bf16 %v29_v18  ;;  %v176_v50 = vunpack.c.l.bf16 %v847_v47  ;;  %v851_v18 = vld [vmem:[%s1192_s0 + $0x4] sm:$0x3] }
   0x7   :  { %87 = vmatpush1.bf16.msra.mxu0 %v999_v5  ;;  %190 = vmatpush1.bf16.msra.mxu1 %v999_v5  ;;  %v122_v15 = vunpack.c.0.s8 %v121_v13 }
   0x8   :  { %88 = vmatprep.subr.bf16.mxu0 %v1006_v6  ;;  %191 = vmatprep.subr.bf16.mxu1 %v1006_v6  ;;  %v27_v10 = vld [vmem:[#allocation2] sm:$0x3]  ;;  %v846_v27 = vld.sshfl [vmem:[#allocation3] sm:$0x3 pattern:$0x76325410] }
   0x9   :  { %v31_v11 = vpack.c.bf16 %v27_v10, %v27_v10  ;;  %v1049_v19 = vsub.s32 %v122_v15, %v124_v16 }
   0xb   :  { %89 = vmatpush1.bf16.msra.mxu0 %v1013_v7  ;;  %192 = vmatpush1.bf16.msra.mxu1 %v1013_v7 }
   0xc   :  { %90 = vmatprep.subr.bf16.mxu0 %v1020_v8  ;;  %193 = vmatprep.subr.bf16.mxu1 %v1020_v8 }
   0xf   :  { %91 = vmatpush1.bf16.msra.mxu0 %v1027_v9  ;;  %194 = vmatpush1.bf16.msra.mxu1 %v1027_v9 }
  0x10   :  { %279 = vmatprep.subr.bf16.mxu0 %v977_v0  ;;  %371 = vmatprep.subr.bf16.mxu1 %v977_v0 }
  0x12   :  { %844 = vmatmul.mubr.msk.bf16.vlgmr.msra.gmra.mxu0 %vm72_vm1, %v31_v11 }
  0x13   :  { %280 = vmatpush1.bf16.msra.mxu0 %v986_v3  ;;  %303 = vmatprep.mubr.bf16.mxu0 %v955_v1 }
  0x14   :  { %281 = vmatprep.subr.bf16.mxu0 %v992_v4 }
  0x17   :  { %282 = vmatpush1.bf16.msra.mxu0 %v999_v5 }
  0x18   :  { %283 = vmatprep.subr.bf16.mxu0 %v1006_v6 }
  0x1b   :  { %284 = vmatpush1.bf16.msra.mxu0 %v1013_v7 }
  0x1c   :  { %285 = vmatprep.subr.bf16.mxu0 %v1020_v8 }
  0x1f   :  { %286 = vmatpush1.bf16.msra.mxu0 %v1027_v9 }
  0x20   :  { %463 = vmatprep.subr.bf16.mxu0 %v977_v0 }
  0xd2   :  { %v110_v17 = vpop.f32.mrf.mxu0 }
  0xd4   :  { %v112_v20 = vpop.f32.mrf.mxu0 }
  0xd5   :  { %v119_v21 = vcombine.low %v110_v17, %v112_v20 }
  0xd6   :  { %v114_v23 = vpop.f32.mrf.mxu0 }
  0xd7   :  { %v126_v24 = vrot.slane %v119_v21, %v1049_v19 }
  0xd8   :  { %v115_v25 = vpop.f32.mrf.mxu0 }
  0xd9   :  { %v128_v26 = vadd.f32 %v126_v24, %v30_v22  ;;  %v268_v22 = vunpack.c.l.bf16 %v851_v18 }
  0xdb   :  { %136 = vrot.lane.b32.xlu0 %v128_v26, %s958_s26  ;;  %v845_v28 = vmul.f32 -1.442695, %v128_v26 }
  0xdd   :  { %891 = vpow2.f32 %v845_v28 }
  0xdf   :  { %149 = vrot.lane.b32.xlu0 %v846_v27, %s958_s26 }
  0xea   :  { %v892_v29 = vpop.eup %891 }
  0xeb   :  { %v132_v30 = vadd.f32 1.0, %v892_v29 }
  0xed   :  { %893 = vrcp.f32 %v132_v30 }
  0xfa   :  { %v894_v33 = vpop.eup %893 }
  0xfb   :  { %v161_v41 = vrot.slane %v894_v33, 2 }
 0x14d   :  { %v137_v31 = vpop.permute.xlu0 %136 }
 0x14e   :  { %v138_v32 = vrot.slane %v137_v31, 2 }
 0x150   :  { %895 = vtanh.f32 %v138_v32 }
 0x151   :  { %v150_v36 = vpop.permute.xlu0 %149 }
 0x152   :  { %v152_v37 = vmul.f32 %v894_v33, %v150_v36 }
 0x15d   :  { %v896_v34 = vpop.eup %895 }
 0x15e   :  { %v153_v35 = vmul.f32 %v896_v34, %v894_v33 }
 0x160   :  { %155 = vrot.lane.b32.xlu1 %v153_v35, %s958_s26 }
 0x1d2   :  { %v156_v38 = vpop.permute.xlu1 %155 }
 0x1d3   :  { %v158_v39 = vadd.f32 %v156_v38, %v152_v37 }
 0x1d5   :  { %897 = vtanh.f32 %v158_v39 }
 0x1e2   :  { %v898_v40 = vpop.eup %897 }
 0x1e3   :  { %164 = vrot.lane.b32.xlu1 %v898_v40, %s958_s26 }
 0x255   :  { %v165_v42 = vpop.permute.xlu1 %164 }
 0x256   :  { %v167_v43 = vmul.f32 %v165_v42, %v161_v41 }
 0x258   :  { %v168_v44 = vpack.c.bf16 %v167_v43, %v167_v43 }
 0x25a   :  { %v171_v45 = vsel %vm72_vm1, %v168_v44, 0  ;;  %848 = vmatmul.mubr.msk.bf16.vlgmr.msra.gmra.mxu1 %vm72_vm1, %v168_v44 }
 0x25b   :  { %173 = vst [vmem:[%s1193_s2] sm:$0x1] %v171_v45  ;;  %372 = vmatpush1.bf16.msra.mxu1 %v986_v3  ;;  %395 = vmatprep.mubr.bf16.mxu1 %v955_v1  ;;  %v855_v45 = vld [vmem:[%s1192_s0 + $0x6] sm:$0x3] }
 0x25c   :  { %373 = vmatprep.subr.bf16.mxu1 %v992_v4 }
 0x25f   :  { %374 = vmatpush1.bf16.msra.mxu1 %v999_v5 }
 0x260   :  { %375 = vmatprep.subr.bf16.mxu1 %v1006_v6 }
 0x263   :  { %376 = vmatpush1.bf16.msra.mxu1 %v1013_v7 }
 0x264   :  { %377 = vmatprep.subr.bf16.mxu1 %v1020_v8 }
 0x267   :  { %378 = vmatpush1.bf16.msra.mxu1 %v1027_v9 }
 0x268   :  { %555 = vmatprep.subr.bf16.mxu1 %v977_v0 }
 0x31a   :  { %v213_v46 = vpop.f32.mrf.mxu1 }
 0x31c   :  { %v215_v48 = vpop.f32.mrf.mxu1 }
 0x31d   :  { %v222_v49 = vcombine.low %v213_v46, %v215_v48  ;;  %v360_v48 = vunpack.c.l.bf16 %v855_v45 }
 0x31e   :  { %v217_v51 = vpop.f32.mrf.mxu1 }
 0x31f   :  { %v229_v52 = vrot.slane %v222_v49, %v1049_v19 }
 0x320   :  { %v218_v53 = vpop.f32.mrf.mxu1 }
 0x321   :  { %v231_v54 = vadd.f32 %v229_v52, %v176_v50 }
 0x323   :  { %239 = vrot.lane.b32.xlu0 %v231_v54, %s958_s26  ;;  %v849_v55 = vmul.f32 -1.442695, %v231_v54 }
 0x325   :  { %899 = vpow2.f32 %v849_v55 }
 0x332   :  { %v900_v56 = vpop.eup %899 }
 0x333   :  { %v235_v57 = vadd.f32 1.0, %v900_v56 }
 0x335   :  { %901 = vrcp.f32 %v235_v57 }
 0x342   :  { %v902_v60 = vpop.eup %901 }
 0x343   :  { %v244_v63 = vmul.f32 %v902_v60, %v158_v39  ;;  %v253_v12 = vrot.slane %v902_v60, 2 }
 0x395   :  { %v240_v58 = vpop.permute.xlu0 %239 }
 0x396   :  { %v241_v59 = vrot.slane %v240_v58, 2 }
 0x398   :  { %903 = vtanh.f32 %v241_v59 }
 0x3a5   :  { %v904_v61 = vpop.eup %903 }
 0x3a6   :  { %v245_v62 = vmul.f32 %v904_v61, %v902_v60 }
 0x3a8   :  { %247 = vrot.lane.b32.xlu1 %v245_v62, %s958_s26 }
 0x41a   :  { %v248_v2 = vpop.permute.xlu1 %247 }
 0x41b   :  { %v250_v10 = vadd.f32 %v248_v2, %v244_v63 }
 0x41d   :  { %905 = vtanh.f32 %v250_v10 }
 0x42a   :  { %v906_v11 = vpop.eup %905 }
 0x42b   :  { %256 = vrot.lane.b32.xlu0 %v906_v11, %s958_s26 }
 0x49d   :  { %v257_v13 = vpop.permute.xlu0 %256 }
 0x49e   :  { %v259_v14 = vmul.f32 %v257_v13, %v253_v12 }
 0x4a0   :  { %v260_v15 = vpack.c.bf16 %v259_v14, %v259_v14 }
 0x4a2   :  { %v262_v16 = vsel %vm72_vm1, %v260_v15, 0  ;;  %852 = vmatmul.mubr.msk.bf16.vlgmr.msra.gmra.mxu0 %vm72_vm1, %v260_v15  ;;  %v859_v15 = vld [vmem:[%s1192_s0 + $0x8] sm:$0x3] }
 0x4a3   :  { %850 = vst [vmem:[%s1193_s2 + $0x1] sm:$0x1] %v262_v16  ;;  %464 = vmatpush1.bf16.msra.mxu0 %v986_v3  ;;  %487 = vmatprep.mubr.bf16.mxu0 %v955_v1  ;;  %v452_v18 = vunpack.c.l.bf16 %v859_v15 }
 0x4a4   :  { %465 = vmatprep.subr.bf16.mxu0 %v992_v4 }
 0x4a7   :  { %466 = vmatpush1.bf16.msra.mxu0 %v999_v5 }
 0x4a8   :  { %467 = vmatprep.subr.bf16.mxu0 %v1006_v6 }
 0x4ab   :  { %468 = vmatpush1.bf16.msra.mxu0 %v1013_v7 }
 0x4ac   :  { %469 = vmatprep.subr.bf16.mxu0 %v1020_v8 }
 0x4af   :  { %470 = vmatpush1.bf16.msra.mxu0 %v1027_v9 }
 0x4b0   :  { %647 = vmatprep.subr.bf16.mxu0 %v977_v0 }
 0x562   :  { %v305_v17 = vpop.f32.mrf.mxu0 }
 0x564   :  { %v307_v20 = vpop.f32.mrf.mxu0 }
 0x565   :  { %v314_v21 = vcombine.low %v305_v17, %v307_v20 }
 0x566   :  { %v309_v23 = vpop.f32.mrf.mxu0 }
 0x567   :  { %v321_v24 = vrot.slane %v314_v21, %v1049_v19 }
 0x568   :  { %v310_v25 = vpop.f32.mrf.mxu0 }
 0x569   :  { %v323_v26 = vadd.f32 %v321_v24, %v268_v22 }
 0x56b   :  { %331 = vrot.lane.b32.xlu1 %v323_v26, %s958_s26  ;;  %v853_v27 = vmul.f32 -1.442695, %v323_v26 }
 0x56d   :  { %907 = vpow2.f32 %v853_v27 }
 0x57a   :  { %v908_v28 = vpop.eup %907 }
 0x57b   :  { %v327_v29 = vadd.f32 1.0, %v908_v28 }
 0x57d   :  { %909 = vrcp.f32 %v327_v29 }
 0x58a   :  { %v910_v32 = vpop.eup %909 }
 0x58b   :  { %v336_v35 = vmul.f32 %v910_v32, %v250_v10  ;;  %v345_v39 = vrot.slane %v910_v32, 2 }
 0x5dd   :  { %v332_v30 = vpop.permute.xlu1 %331 }
 0x5de   :  { %v333_v31 = vrot.slane %v332_v30, 2 }
 0x5e0   :  { %911 = vtanh.f32 %v333_v31 }
 0x5ed   :  { %v912_v33 = vpop.eup %911 }
 0x5ee   :  { %v337_v34 = vmul.f32 %v912_v33, %v910_v32 }
 0x5f0   :  { %339 = vrot.lane.b32.xlu0 %v337_v34, %s958_s26 }
 0x662   :  { %v340_v36 = vpop.permute.xlu0 %339 }
 0x663   :  { %v342_v37 = vadd.f32 %v340_v36, %v336_v35 }
 0x665   :  { %913 = vtanh.f32 %v342_v37 }
 0x672   :  { %v914_v38 = vpop.eup %913 }
 0x673   :  { %348 = vrot.lane.b32.xlu1 %v914_v38, %s958_s26 }
 0x6e5   :  { %v349_v40 = vpop.permute.xlu1 %348 }
 0x6e6   :  { %v351_v41 = vmul.f32 %v349_v40, %v345_v39 }
 0x6e8   :  { %v352_v42 = vpack.c.bf16 %v351_v41, %v351_v41 }
 0x6ea   :  { %v354_v43 = vsel %vm72_vm1, %v352_v42, 0  ;;  %856 = vmatmul.mubr.msk.bf16.vlgmr.msra.gmra.mxu1 %vm72_vm1, %v352_v42  ;;  %v863_v42 = vld [vmem:[%s1192_s0 + $0xa] sm:$0x3] }
 0x6eb   :  { %854 = vst [vmem:[%s1193_s2 + $0x2] sm:$0x1] %v354_v43  ;;  %556 = vmatpush1.bf16.msra.mxu1 %v986_v3  ;;  %579 = vmatprep.mubr.bf16.mxu1 %v955_v1 }
 0x6ec   :  { %557 = vmatprep.subr.bf16.mxu1 %v992_v4 }
 0x6ef   :  { %558 = vmatpush1.bf16.msra.mxu1 %v999_v5 }
 0x6f0   :  { %559 = vmatprep.subr.bf16.mxu1 %v1006_v6 }
 0x6f3   :  { %560 = vmatpush1.bf16.msra.mxu1 %v1013_v7 }
 0x6f4   :  { %561 = vmatprep.subr.bf16.mxu1 %v1020_v8 }
 0x6f7   :  { %562 = vmatpush1.bf16.msra.mxu1 %v1027_v9 }
 0x6f8   :  { %739 = vmatprep.subr.bf16.mxu1 %v977_v0 }
 0x7aa   :  { %v397_v44 = vpop.f32.mrf.mxu1 }
 0x7ac   :  { %v399_v46 = vpop.f32.mrf.mxu1 }
 0x7ad   :  { %v406_v47 = vcombine.low %v397_v44, %v399_v46 }
 0x7ae   :  { %v401_v49 = vpop.f32.mrf.mxu1 }
 0x7af   :  { %v413_v50 = vrot.slane %v406_v47, %v1049_v19 }
 0x7b0   :  { %v402_v51 = vpop.f32.mrf.mxu1 }
 0x7b1   :  { %v415_v52 = vadd.f32 %v413_v50, %v360_v48 }
 0x7b3   :  { %423 = vrot.lane.b32.xlu0 %v415_v52, %s958_s26  ;;  %v857_v53 = vmul.f32 -1.442695, %v415_v52 }
 0x7b5   :  { %915 = vpow2.f32 %v857_v53 }
 0x7c2   :  { %v916_v54 = vpop.eup %915 }
 0x7c3   :  { %v419_v55 = vadd.f32 1.0, %v916_v54 }
 0x7c5   :  { %917 = vrcp.f32 %v419_v55 }
 0x7d2   :  { %v918_v57 = vpop.eup %917 }
 0x7d3   :  { %v428_v60 = vmul.f32 %v918_v57, %v342_v37  ;;  %v437_v2 = vrot.slane %v918_v57, 2 }
 0x825   :  { %v424_v0 = vpop.permute.xlu0 %423 }
 0x826   :  { %v425_v56 = vrot.slane %v424_v0, 2 }
 0x828   :  { %919 = vtanh.f32 %v425_v56 }
 0x835   :  { %v920_v58 = vpop.eup %919 }
 0x836   :  { %v429_v59 = vmul.f32 %v920_v58, %v918_v57 }
 0x838   :  { %431 = vrot.lane.b32.xlu1 %v429_v59, %s958_s26  ;;  %v867_v59 = vld [vmem:[%s1192_s0 + $0xc] sm:$0x3] }
 0x8aa   :  { %v432_v61 = vpop.permute.xlu1 %431 }
 0x8ab   :  { %v434_v62 = vadd.f32 %v432_v61, %v428_v60 }
 0x8ad   :  { %921 = vtanh.f32 %v434_v62 }
 0x8ba   :  { %v922_v63 = vpop.eup %921 }
 0x8bb   :  { %440 = vrot.lane.b32.xlu0 %v922_v63, %s958_s26 }
 0x92d   :  { %v441_v10 = vpop.permute.xlu0 %440 }
 0x92e   :  { %v443_v11 = vmul.f32 %v441_v10, %v437_v2 }
 0x930   :  { %v444_v12 = vpack.c.bf16 %v443_v11, %v443_v11 }
 0x932   :  { %v446_v13 = vsel %vm72_vm1, %v444_v12, 0  ;;  %860 = vmatmul.mubr.msk.bf16.vlgmr.msra.gmra.mxu0 %vm72_vm1, %v444_v12 }
 0x933   :  { %858 = vst [vmem:[%s1193_s2 + $0x3] sm:$0x1] %v446_v13  ;;  %648 = vmatpush1.bf16.msra.mxu0 %v986_v3  ;;  %671 = vmatprep.mubr.bf16.mxu0 %v955_v1 }
 0x934   :  { %649 = vmatprep.subr.bf16.mxu0 %v992_v4 }
 0x937   :  { %650 = vmatpush1.bf16.msra.mxu0 %v999_v5 }
 0x938   :  { %651 = vmatprep.subr.bf16.mxu0 %v1006_v6 }
 0x93b   :  { %652 = vmatpush1.bf16.msra.mxu0 %v1013_v7 }
 0x93c   :  { %653 = vmatprep.subr.bf16.mxu0 %v1020_v8 }
 0x93f   :  { %654 = vmatpush1.bf16.msra.mxu0 %v1027_v9 }
 0x9f2   :  { %v489_v14 = vpop.f32.mrf.mxu0 }
 0x9f4   :  { %v491_v16 = vpop.f32.mrf.mxu0 }
 0x9f5   :  { %v498_v17 = vcombine.low %v489_v14, %v491_v16 }
 0x9f6   :  { %v493_v20 = vpop.f32.mrf.mxu0 }
 0x9f7   :  { %v505_v21 = vrot.slane %v498_v17, %v1049_v19 }
 0x9f8   :  { %v494_v22 = vpop.f32.mrf.mxu0 }
 0x9f9   :  { %v507_v23 = vadd.f32 %v505_v21, %v452_v18 }
 0x9fb   :  { %515 = vrot.lane.b32.xlu1 %v507_v23, %s958_s26  ;;  %v861_v24 = vmul.f32 -1.442695, %v507_v23 }
 0x9fd   :  { %923 = vpow2.f32 %v861_v24 }
 0xa0a   :  { %v924_v25 = vpop.eup %923 }
 0xa0b   :  { %v511_v26 = vadd.f32 1.0, %v924_v25 }
 0xa0d   :  { %925 = vrcp.f32 %v511_v26 }
 0xa1a   :  { %v926_v29 = vpop.eup %925 }
 0xa1b   :  { %v520_v32 = vmul.f32 %v926_v29, %v434_v62  ;;  %v529_v36 = vrot.slane %v926_v29, 2  ;;  %v636_v62 = vunpack.c.l.bf16 %v867_v59 }
 0xa6d   :  { %v516_v27 = vpop.permute.xlu1 %515 }
 0xa6e   :  { %v517_v28 = vrot.slane %v516_v27, 2 }
 0xa70   :  { %927 = vtanh.f32 %v517_v28 }
 0xa7d   :  { %v928_v30 = vpop.eup %927 }
 0xa7e   :  { %v521_v31 = vmul.f32 %v928_v30, %v926_v29 }
 0xa80   :  { %523 = vrot.lane.b32.xlu0 %v521_v31, %s958_s26  ;;  %v871_v31 = vld [vmem:[%s1192_s0 + $0xe] sm:$0x3] }
 0xaf2   :  { %v524_v33 = vpop.permute.xlu0 %523 }
 0xaf3   :  { %v526_v34 = vadd.f32 %v524_v33, %v520_v32 }
 0xaf5   :  { %929 = vtanh.f32 %v526_v34 }
 0xb02   :  { %v930_v35 = vpop.eup %929 }
 0xb03   :  { %532 = vrot.lane.b32.xlu1 %v930_v35, %s958_s26 }
 0xb75   :  { %v533_v37 = vpop.permute.xlu1 %532 }
 0xb76   :  { %v535_v38 = vmul.f32 %v533_v37, %v529_v36 }
 0xb78   :  { %v536_v39 = vpack.c.bf16 %v535_v38, %v535_v38 }
 0xb7a   :  { %v538_v40 = vsel %vm72_vm1, %v536_v39, 0  ;;  %864 = vmatmul.mubr.msk.bf16.vlgmr.msra.gmra.mxu1 %vm72_vm1, %v536_v39 }
 0xb7b   :  { %862 = vst [vmem:[%s1193_s2 + $0x4] sm:$0x1] %v538_v40  ;;  %740 = vmatpush1.bf16.msra.mxu1 %v986_v3  ;;  %763 = vmatprep.mubr.bf16.mxu1 %v955_v1  ;;  %v544_v1 = vunpack.c.l.bf16 %v863_v42 }
 0xb7c   :  { %741 = vmatprep.subr.bf16.mxu1 %v992_v4 }
 0xb7f   :  { %742 = vmatpush1.bf16.msra.mxu1 %v999_v5 }
 0xb80   :  { %743 = vmatprep.subr.bf16.mxu1 %v1006_v6 }
 0xb83   :  { %744 = vmatpush1.bf16.msra.mxu1 %v1013_v7 }
 0xb84   :  { %745 = vmatprep.subr.bf16.mxu1 %v1020_v8 }
 0xb87   :  { %746 = vmatpush1.bf16.msra.mxu1 %v1027_v9 }
 0xc3a   :  { %v581_v41 = vpop.f32.mrf.mxu1 }
 0xc3c   :  { %v583_v3 = vpop.f32.mrf.mxu1 }
 0xc3d   :  { %v590_v43 = vcombine.low %v581_v41, %v583_v3 }
 0xc3e   :  { %v585_v44 = vpop.f32.mrf.mxu1 }
 0xc3f   :  { %v597_v4 = vrot.slane %v590_v43, %v1049_v19 }
 0xc40   :  { %v586_v5 = vpop.f32.mrf.mxu1 }
 0xc41   :  { %v599_v45 = vadd.f32 %v597_v4, %v544_v1 }
 0xc43   :  { %607 = vrot.lane.b32.xlu0 %v599_v45, %s958_s26  ;;  %v865_v6 = vmul.f32 -1.442695, %v599_v45 }
 0xc45   :  { %931 = vpow2.f32 %v865_v6 }
 0xc52   :  { %v932_v7 = vpop.eup %931 }
 0xc53   :  { %v603_v8 = vadd.f32 1.0, %v932_v7 }
 0xc55   :  { %933 = vrcp.f32 %v603_v8 }
 0xc62   :  { %v934_v47 = vpop.eup %933 }
 0xc63   :  { %v612_v50 = vmul.f32 %v934_v47, %v526_v34  ;;  %v621_v54 = vrot.slane %v934_v47, 2  ;;  %v728_v34 = vunpack.c.l.bf16 %v871_v31 }
 0xcb5   :  { %v608_v9 = vpop.permute.xlu0 %607 }
 0xcb6   :  { %v609_v46 = vrot.slane %v608_v9, 2 }
 0xcb8   :  { %935 = vtanh.f32 %v609_v46 }
 0xcc5   :  { %v936_v48 = vpop.eup %935 }
 0xcc6   :  { %v613_v49 = vmul.f32 %v936_v48, %v934_v47 }
 0xcc8   :  { %615 = vrot.lane.b32.xlu1 %v613_v49, %s958_s26 }
 0xd3a   :  { %v616_v51 = vpop.permute.xlu1 %615 }
 0xd3b   :  { %v618_v52 = vadd.f32 %v616_v51, %v612_v50 }
 0xd3d   :  { %937 = vtanh.f32 %v618_v52 }
 0xd4a   :  { %v938_v53 = vpop.eup %937 }
 0xd4b   :  { %624 = vrot.lane.b32.xlu0 %v938_v53, %s958_s26 }
 0xdbd   :  { %v625_v55 = vpop.permute.xlu0 %624 }
 0xdbe   :  { %v627_v0 = vmul.f32 %v625_v55, %v621_v54 }
 0xdc0   :  { %v628_v56 = vpack.c.bf16 %v627_v0, %v627_v0 }
 0xdc2   :  { %v630_v57 = vsel %vm72_vm1, %v628_v56, 0  ;;  %868 = vmatmul.mubr.msk.bf16.vlgmr.msra.gmra.mxu0 %vm72_vm1, %v628_v56 }
 0xdc3   :  { %866 = vst [vmem:[%s1193_s2 + $0x5] sm:$0x1] %v630_v57 }
 0xe82   :  { %v673_v58 = vpop.f32.mrf.mxu0 }
 0xe84   :  { %v675_v60 = vpop.f32.mrf.mxu0 }
 0xe85   :  { %v682_v61 = vcombine.low %v673_v58, %v675_v60 }
 0xe86   :  { %v677_v63 = vpop.f32.mrf.mxu0 }
 0xe87   :  { %v689_v2 = vrot.slane %v682_v61, %v1049_v19 }
 0xe88   :  { %v678_v10 = vpop.f32.mrf.mxu0 }
 0xe89   :  { %v691_v11 = vadd.f32 %v689_v2, %v636_v62 }
 0xe8b   :  { %699 = vrot.lane.b32.xlu1 %v691_v11, %s958_s26  ;;  %v869_v12 = vmul.f32 -1.442695, %v691_v11 }
 0xe8d   :  { %939 = vpow2.f32 %v869_v12 }
 0xe9a   :  { %v940_v13 = vpop.eup %939 }
 0xe9b   :  { %v695_v14 = vadd.f32 1.0, %v940_v13 }
 0xe9d   :  { %941 = vrcp.f32 %v695_v14 }
 0xeaa   :  { %v942_v17 = vpop.eup %941 }
 0xeab   :  { %v704_v21 = vmul.f32 %v942_v17, %v618_v52  ;;  %v713_v25 = vrot.slane %v942_v17, 2 }
 0xefd   :  { %v700_v15 = vpop.permute.xlu1 %699 }
 0xefe   :  { %v701_v16 = vrot.slane %v700_v15, 2 }
 0xf00   :  { %943 = vtanh.f32 %v701_v16 }
 0xf0d   :  { %v944_v18 = vpop.eup %943 }
 0xf0e   :  { %v705_v20 = vmul.f32 %v944_v18, %v942_v17 }
 0xf10   :  { %707 = vrot.lane.b32.xlu0 %v705_v20, %s958_s26 }
 0xf82   :  { %v708_v22 = vpop.permute.xlu0 %707 }
 0xf83   :  { %v710_v23 = vadd.f32 %v708_v22, %v704_v21 }
 0xf85   :  { %945 = vtanh.f32 %v710_v23 }
 0xf92   :  { %v946_v24 = vpop.eup %945 }
 0xf93   :  { %716 = vrot.lane.b32.xlu1 %v946_v24, %s958_s26 }
0x1005   :  { %v717_v26 = vpop.permute.xlu1 %716 }
0x1006   :  { %v719_v27 = vmul.f32 %v717_v26, %v713_v25 }
0x1008   :  { %v720_v28 = vpack.c.bf16 %v719_v27, %v719_v27 }
0x100a   :  { %v722_v29 = vsel %vm72_vm1, %v720_v28, 0  ;;  %872 = vmatmul.mubr.msk.bf16.vlgmr.msra.gmra.mxu1 %vm72_vm1, %v720_v28 }
0x100b   :  { %870 = vst [vmem:[%s1193_s2 + $0x6] sm:$0x1] %v722_v29 }
0x10ca   :  { %v765_v30 = vpop.f32.mrf.mxu1 }
0x10cc   :  { %v767_v32 = vpop.f32.mrf.mxu1 }
0x10cd   :  { %v774_v33 = vcombine.low %v765_v30, %v767_v32 }
0x10ce   :  { %v769_v35 = vpop.f32.mrf.mxu1 }
0x10cf   :  { %v781_v36 = vrot.slane %v774_v33, %v1049_v19 }
0x10d0   :  { %v770_v37 = vpop.f32.mrf.mxu1 }
0x10d1   :  { %v783_v38 = vadd.f32 %v781_v36, %v728_v34 }
0x10d3   :  { %791 = vrot.lane.b32.xlu0 %v783_v38, %s958_s26  ;;  %v873_v39 = vmul.f32 -1.442695, %v783_v38 }
0x10d5   :  { %947 = vpow2.f32 %v873_v39 }
0x10e2   :  { %v948_v40 = vpop.eup %947 }
0x10e3   :  { %v787_v41 = vadd.f32 1.0, %v948_v40 }
0x10e5   :  { %949 = vrcp.f32 %v787_v41 }
0x10f2   :  { %v950_v43 = vpop.eup %949 }
0x10f3   :  { %v796_v4 = vmul.f32 %v950_v43, %v710_v23  ;;  %v805_v9 = vrot.slane %v950_v43, 2 }
0x1145   :  { %v792_v42 = vpop.permute.xlu0 %791 }
0x1146   :  { %v793_v3 = vrot.slane %v792_v42, 2 }
0x1148   :  { %951 = vtanh.f32 %v793_v3 }
0x1155   :  { %v952_v1 = vpop.eup %951 }
0x1156   :  { %v797_v44 = vmul.f32 %v952_v1, %v950_v43 }
0x1158   :  { %799 = vrot.lane.b32.xlu1 %v797_v44, %s958_s26 }
0x11ca   :  { %v800_v5 = vpop.permute.xlu1 %799 }
0x11cb   :  { %v802_v45 = vadd.f32 %v800_v5, %v796_v4 }
0x11cd   :  { %953 = vtanh.f32 %v802_v45  ;;  %v827_v6 = vrot.slane %v802_v45, %v1049_v19 }
0x11cf   :  { %828 = vrot.lane.b32.xlu1 %v827_v6, %s958_s26 }
0x11da   :  { %v954_v7 = vpop.eup %953 }
0x11db   :  { %808 = vrot.lane.b32.xlu0 %v954_v7, %s958_s26 }
0x1241   :  { %v829_v8 = vpop.permute.xlu1 %828 }
0x1242   :  { %831 = vst.msk [vmem:[#allocation3] sm:$0x3] %vm16_vm0, %v829_v8 }
0x124d   :  { %v809_v46 = vpop.permute.xlu0 %808 }
0x124e   :  { %v811_v47 = vmul.f32 %v809_v46, %v805_v9 }
0x1250   :  { %v812_v48 = vpack.c.bf16 %v811_v47, %v811_v47  ;;  %819 = vst.msk [vmem:[#allocation2] sm:$0x3] %vm16_vm0, %v811_v47 }
0x1252   :  { %v814_v49 = vsel %vm72_vm1, %v812_v48, 0 }
0x1253   :  { %874 = vst [vmem:[%s1193_s2 + $0x7] sm:$0x1] %v814_v49 }

</bundles_post_ra>
